<compile_context>
chip_gen: v6e
topology: v6e:2x2x1
jax: 0.10.0
libtpu: 0.0.40
codegen_flags: <defaults>
</compile_context>

<pallas_src>
import functools

import jax
import jax.numpy as jnp
from jax.experimental import pallas as pl
from jax.experimental.pallas import tpu as pltpu


def _round_up(x, m):
    return (x + m - 1) // m * m


def _same_pad_amount(size, ksize, stride):
    out = -(-size // stride)
    pad = max(0, (out - 1) * stride + ksize - size)
    lo = pad // 2
    return lo, pad - lo


def _pad_and_unfold(x, ksize, stride):
    """x: (B, C, H, W) -> (B, L, C*k*k).  Patch rows are row-major over positions,
    columns flattened in (c, kh, kw) order: identical to same_padding +
    torch.nn.functional.unfold in the reference module."""
    B, C, H, W = x.shape
    lo_h, hi_h = _same_pad_amount(H, ksize, stride)
    lo_w, hi_w = _same_pad_amount(W, ksize, stride)
    xp = jnp.pad(x, ((0, 0), (0, 0), (lo_h, hi_h), (lo_w, hi_w)))
    Hp, Wp = H + lo_h + hi_h, W + lo_w + hi_w
    nh = (Hp - ksize) // stride + 1
    nw = (Wp - ksize) // stride + 1
    taps = []
    for kh in range(ksize):
        for kw in range(ksize):
            taps.append(xp[:, :, kh:kh + (nh - 1) * stride + 1:stride,
                               kw:kw + (nw - 1) * stride + 1:stride])
    st = jnp.stack(taps, axis=2)               # (B, C, k*k, nh, nw)
    st = jnp.transpose(st, (0, 3, 4, 1, 2))    # (B, nh, nw, C, k*k)
    return st.reshape(B, nh * nw, C * ksize * ksize)


def _nearest_resize(x, out_h, out_w):
    """PyTorch F.interpolate(mode='nearest', size=...): src = floor(dst * in/out)."""
    B, C, H, W = x.shape
    ri = jnp.floor(jnp.arange(out_h) * (H / out_h)).astype(jnp.int32)
    ci = jnp.floor(jnp.arange(out_w) * (W / out_w)).astype(jnp.int32)
    return x[:, :, ri, :][:, :, :, ci]


def _overlap_add_fold(blended, B, C, h, w, rate, rbs):
    """== F.conv_transpose2d(att, defilter, stride=rate) overlap-add (pre-crop),
    expressed as a sum of 4 shifted non-overlapping reshapes (the 2*rate kernel
    splits into a 2x2 grid of rate x rate sub-blocks) instead of rbs^2
    dynamic-update-slice HBM round trips."""
    br = blended.reshape(B, h, w, C, rbs, rbs)
    full_h = (h - 1) * rate + rbs
    full_w = (w - 1) * rate + rbs
    n = rbs // rate                            # == 2 (rbs = 2*rate)
    acc = jnp.zeros((B, C, full_h, full_w), jnp.float32)
    for a in range(n):
        for b in range(n):
            piece = br[:, :, :, :, a * rate:(a + 1) * rate, b * rate:(b + 1) * rate]
            piece = jnp.transpose(piece, (0, 3, 1, 4, 2, 5))          # (B,C,h,rate,w,rate)
            piece = piece.reshape(B, C, h * rate, w * rate)
            acc = acc + jnp.pad(piece, ((0, 0), (0, 0),
                                        (a * rate, (n - 1 - a) * rate),
                                        (b * rate, (n - 1 - b) * rate)))
    return acc


def _ca_kernel(win_ref, filt_ref, bias_ref, defilt_ref, out_ref,
               m_sc, l_sc, acc_sc, *, scale, exp_dtype):
    pi = pl.program_id(2)

    @pl.when(pi == 0)
    def _():
        m_sc[...] = jnp.full(m_sc.shape, -1e30, m_sc.dtype)
        l_sc[...] = jnp.zeros(l_sc.shape, l_sc.dtype)
        acc_sc[...] = jnp.zeros(acc_sc.shape, acc_sc.dtype)

    win = win_ref[0]          # (TQ, Kc)  query windows (im2col rows), bf16
    filt = filt_ref[0]        # (Kc, TP)  L2-normed patch filters^T, keep baked in, bf16
    bias = bias_ref[...]      # (1, TP)   0.0 for real patches, -1e30 for padding

    # patch-similarity "conv" as one MXU matmul; masked patches score exactly 0
    # (their filter columns are zero) so they still feed the softmax denominator,
    # matching F.softmax(attention * keep * scale, dim=1) exactly.
    s = jnp.dot(win, filt, preferred_element_type=jnp.float32) * scale + bias

    m_prev = m_sc[...]
    m_new = jnp.maximum(m_prev, jnp.max(s, axis=-1, keepdims=True))
    alpha = jnp.exp(m_prev - m_new)                        # f32, (TQ, 1)
    p = jnp.exp((s - m_new).astype(exp_dtype))             # EUP; bf16 on v6e/v7x

    l_sc[...] = alpha * l_sc[...] + jnp.sum(p.astype(jnp.float32), axis=-1,
                                            keepdims=True)
    # defilter rows of masked patches are zeroed in the wrapper == att * keep.
    acc_sc[...] = alpha * acc_sc[...] + jnp.dot(
        p.astype(jnp.bfloat16), defilt_ref[0], preferred_element_type=jnp.float32)
    m_sc[...] = m_new

    @pl.when(pi == pl.num_programs(2) - 1)
    def _():
        out_ref[0] = (acc_sc[...] * pl.reciprocal(l_sc[...], approx=True)
                      ).astype(out_ref.dtype)


def _vmem_limit_bytes(tq, tp, kc, kd, vmem_cap):
    # every auto-pipelined operand is double-buffered
    need = (2 * (tq * kc * 2 + kc * tp * 2 + tp * 4 + tp * kd * 2)   # bf16 ins + f32 bias
            + 2 * (tq * kd * 4)                                      # f32 out
            + tq * kd * 4 + 2 * tq * 128 * 4                         # scratch
            + 4 * tq * tp * 4)                                       # s/p temporaries
    limit = min(max(need + (8 << 20), 32 << 20), (3 * vmem_cap) // 4)
    return int(max(limit, need))


def contextual_attention(x, mask, *, block_size, stride, attention_rate,
                         softmax_scale=10.0):
    x = x.astype(jnp.float32)
    mask = mask.astype(jnp.float32)
    B, C, H, W = x.shape
    rate = int(attention_rate)
    bs = int(block_size)
    assert stride == 1, "the module's reshape/view steps require stride == 1"
    assert H % rate == 0 and W % rate == 0

    if mask.shape[2] != H or mask.shape[3] != W:
        mask = _nearest_resize(mask, H, W)

    rbs = 2 * rate                     # raw_x_block_size
    h, w = H // rate, W // rate
    P = h * w                          # number of patches
    Q = h * w                          # number of queries

    # ---- wrapper-side glue (pure data movement, matches the PyTorch module) ----
    defilter = _pad_and_unfold(x, rbs, rate * stride)          # (B, P, Kd)
    Kd = defilter.shape[-1]

    # nearest downsample by attention_rate (src = floor(dst * rate))
    x_rs = x[:, :, 0:h * rate:rate, 0:w * rate:rate]
    mask_rs = mask[:, :, 0:h * rate:rate, 0:w * rate:rate]

    # query windows == conv filter patches for stride=1 ('same' pad, ksize=block_size)
    patches = _pad_and_unfold(x_rs, bs, stride)                # (B, Q, Kc)
    Kc = patches.shape[-1]

    # patch L2 normalization; escape_nan (1e-4) added elementwise inside the sum,
    # exactly like reduce_sum(pow(x,2) + escape_nan) in the module.
    sq = jnp.sum(patches * patches + 1e-4, axis=-1, keepdims=True)
    filt = patches / jnp.sqrt(sq)                              # (B, P, Kc)

    # keep: 1.0 for patches whose mask-patch mean is exactly zero (hard 0/1 mask,
    # same exact-equality semantics as torch.eq(mean, 0) in the reference).
    mask_unf = _pad_and_unfold(mask_rs, bs, stride)
    keep = (jnp.mean(mask_unf, axis=-1, keepdims=True) == 0.0).astype(jnp.float32)

    # Bake keep into both matmul operands (removes the per-element keep multiplies
    # from the kernel): zero filter columns -> masked scores exactly 0; zero
    # defilter rows -> equivalent to att * keep before the second matmul.
    filt_t = jnp.transpose(filt * keep, (0, 2, 1))             # (B, Kc, P)
    defilter = defilter * keep                                 # (B, P, Kd)

    # ---- per-generation tiling / padding ----
    vmem_cap = 64 << 20
    try:
        vmem_cap = int(pltpu.get_tpu_info().vmem_capacity_bytes)
    except Exception:
        pass
    kind = ""
    try:
        kind = jax.devices()[0].device_kind.lower()
    except Exception:
        pass
    # bf16 EUP exists on v6e/v7x only; keep exp in f32 elsewhere (v5e, v4, unknown).
    exp_dtype = (jnp.bfloat16 if any(t in kind for t in ("v6", "v7", "7x"))
                 else jnp.float32)

    if vmem_cap >= (96 << 20):         # v5e / v6e: 128 MiB physical VMEM
        tq_cap = tp_cap = 512
    else:                              # v7x: 64 MiB physical VMEM
        tq_cap = tp_cap = 256

    TQ = min(tq_cap, _round_up(Q, 128))
    if B * (-(-Q // TQ)) < 2:          # ensure >= 2 grid points (v7x: 2 TCs/chip)
        TQ = max(8, _round_up(-(-Q // 2), 8))
    TP = min(tp_cap, _round_up(P, 128))

    Qp = _round_up(Q, TQ)
    Pp = _round_up(P, TP)
    Kc_pad = _round_up(Kc, 128) if Kc < 128 else _round_up(Kc, 8)   # lane-dense contraction
    Kd_pad = _round_up(Kd, 128)                                     # lane-dense output stores

    windows = jnp.pad(patches.astype(jnp.bfloat16),
                      ((0, 0), (0, Qp - Q), (0, Kc_pad - Kc)))
    filt_km = jnp.pad(filt_t.astype(jnp.bfloat16),
                      ((0, 0), (0, Kc_pad - Kc), (0, Pp - P)))
    defilt = jnp.pad(defilter.astype(jnp.bfloat16),
                     ((0, 0), (0, Pp - P), (0, Kd_pad - Kd)))
    # additive bias: 0 for real patches, -1e30 for padded patch columns so they
    # drop out of the softmax denominator.
    bias = jnp.where(jnp.arange(Pp) < P, 0.0, -1e30).astype(jnp.float32)[None, :]

    grid = (B, Qp // TQ, Pp // TP)
    vmem_limit = _vmem_limit_bytes(TQ, TP, Kc_pad, Kd_pad, vmem_cap)

    blended = pl.pallas_call(
        functools.partial(_ca_kernel, scale=float(softmax_scale), exp_dtype=exp_dtype),
        out_shape=jax.ShapeDtypeStruct((B, Qp, Kd_pad), jnp.float32),
        grid=grid,
        in_specs=[
            pl.BlockSpec((1, TQ, Kc_pad), lambda b, q, p: (b, q, 0)),   # query windows
            pl.BlockSpec((1, Kc_pad, TP), lambda b, q, p: (b, 0, p)),   # filters^T (keep baked in)
            pl.BlockSpec((1, TP), lambda b, q, p: (0, p)),              # padding bias
            pl.BlockSpec((1, TP, Kd_pad), lambda b, q, p: (b, p, 0)),   # deconv patch bank
        ],
        out_specs=pl.BlockSpec((1, TQ, Kd_pad), lambda b, q, p: (b, q, 0)),
        scratch_shapes=[
            pltpu.VMEM((TQ, 1), jnp.float32),        # running max
            pltpu.VMEM((TQ, 1), jnp.float32),        # running softmax denominator
            pltpu.VMEM((TQ, Kd_pad), jnp.float32),   # f32 output accumulator
        ],
        compiler_params=pltpu.CompilerParams(
            dimension_semantics=("parallel", "parallel", "arbitrary"),
            vmem_limit_bytes=vmem_limit,
        ),
    )(windows, filt_km, bias, defilt)

    blended = blended[:, :Q, :Kd]

    # overlap-add fold == F.conv_transpose2d(stride=rate, padding=1), then /4
    acc = _overlap_add_fold(blended, B, C, h, w, rate, rbs)
    full_h = (h - 1) * rate + rbs
    full_w = (w - 1) * rate + rbs
    return acc[:, :, 1:full_h - 1, 1:full_w - 1] / 4.0


if __name__ == "__main__":
    key = jax.random.PRNGKey(0)
    B, C, H, W = 2, 4, 16, 16
    block_size, stride, attention_rate, softmax_scale = 3, 1, 2, 10.0

    x = jax.random.normal(key, (B, C, H, W), dtype=jnp.float32)
    mask = jnp.zeros((B, 1, H, W), jnp.float32)
    mask = mask.at[:, :, 4:10, 6:12].set(1.0)   # rectangular hole = masked region

    out = contextual_attention(x, mask, block_size=block_size, stride=stride,
                               attention_rate=attention_rate,
                               softmax_scale=softmax_scale)
    out = jax.block_until_ready(out)
    assert out.shape == (B, C, H, W), out.shape
    assert bool(jnp.all(jnp.isfinite(out)))
    print("KERNEL_OK")
</pallas_src>

<mosaic_0001>
module attributes {stable_mosaic.version = 11 : i64} {
  func.func @_ca_kernel(%arg0: i32, %arg1: i32, %arg2: i32, %arg3: memref<1x128x128xbf16, #tpu.memory_space<vmem>>, %arg4: memref<1x128x128xbf16, #tpu.memory_space<vmem>>, %arg5: memref<1x128xf32, #tpu.memory_space<vmem>>, %arg6: memref<1x128x128xbf16, #tpu.memory_space<vmem>>, %arg7: memref<1x128x128xf32, #tpu.memory_space<vmem>>, %arg8: memref<128x1xf32, #tpu.memory_space<vmem>>, %arg9: memref<128x1xf32, #tpu.memory_space<vmem>>, %arg10: memref<128x128xf32, #tpu.memory_space<vmem>>) attributes {dimension_semantics = [#tpu.dimension_semantics<parallel>, #tpu.dimension_semantics<parallel>, #tpu.dimension_semantics<arbitrary>], iteration_bounds = array<i64: 2, 1, 1>, scalar_prefetch = 0 : i64, scratch_operands = 3 : i64, tpu.core_type = #tpu.core_type<tc>, window_params = [{transform_indices = @transform_0, window_bounds = array<i64: 1, 128, 128>}, {transform_indices = @transform_1, window_bounds = array<i64: 1, 128, 128>}, {transform_indices = @transform_2, window_bounds = array<i64: 1, 128>}, {transform_indices = @transform_3, window_bounds = array<i64: 1, 128, 128>}, {transform_indices = @transform_4, window_bounds = array<i64: 1, 128, 128>}]} {
    %c0_i32 = arith.constant 0 : i32
    %0 = arith.cmpi eq, %arg2, %c0_i32 : i32
    %1 = arith.extui %0 : i1 to i32
    %c0_i32_0 = arith.constant 0 : i32
    %2 = arith.cmpi ne, %1, %c0_i32_0 : i32
    scf.if %2 {
      %cst_29 = arith.constant -1.000000e+30 : f32
      %41 = vector.broadcast %cst_29 : f32 to vector<128x1xf32>
      %c0_30 = arith.constant 0 : index
      %c0_31 = arith.constant 0 : index
      %42 = vector.load %arg8[%c0_30, %c0_31] : memref<128x1xf32, #tpu.memory_space<vmem>>, vector<128x1xf32>
      tpu.vector_store %arg8[%c0_30, %c0_31], %41 {strides = array<i32>} : memref<128x1xf32, #tpu.memory_space<vmem>>, vector<128x1xf32>,
      %cst_32 = arith.constant 0.000000e+00 : f32
      %43 = vector.broadcast %cst_32 : f32 to vector<128x1xf32>
      %c0_33 = arith.constant 0 : index
      %c0_34 = arith.constant 0 : index
      %44 = vector.load %arg9[%c0_33, %c0_34] : memref<128x1xf32, #tpu.memory_space<vmem>>, vector<128x1xf32>
      tpu.vector_store %arg9[%c0_33, %c0_34], %43 {strides = array<i32>} : memref<128x1xf32, #tpu.memory_space<vmem>>, vector<128x1xf32>,
      %cst_35 = arith.constant 0.000000e+00 : f32
      %45 = vector.broadcast %cst_35 : f32 to vector<128x128xf32>
      %c0_36 = arith.constant 0 : index
      %c0_37 = arith.constant 0 : index
      %46 = vector.load %arg10[%c0_36, %c0_37] : memref<128x128xf32, #tpu.memory_space<vmem>>, vector<128x128xf32>
      tpu.vector_store %arg10[%c0_36, %c0_37], %45 {strides = array<i32>} : memref<128x128xf32, #tpu.memory_space<vmem>>, vector<128x128xf32>,
    } else {
    }
    %c0 = arith.constant 0 : index
    %c0_1 = arith.constant 0 : index
    %c0_2 = arith.constant 0 : index
    %3 = vector.load %arg3[%c0, %c0_1, %c0_2] : memref<1x128x128xbf16, #tpu.memory_space<vmem>>, vector<1x128x128xbf16>
    %4 = vector.shape_cast %3 : vector<1x128x128xbf16> to vector<128x128xbf16>
    %c0_3 = arith.constant 0 : index
    %c0_4 = arith.constant 0 : index
    %c0_5 = arith.constant 0 : index
    %5 = vector.load %arg4[%c0_3, %c0_4, %c0_5] : memref<1x128x128xbf16, #tpu.memory_space<vmem>>, vector<1x128x128xbf16>
    %6 = vector.shape_cast %5 : vector<1x128x128xbf16> to vector<128x128xbf16>
    %c0_6 = arith.constant 0 : index
    %c0_7 = arith.constant 0 : index
    %7 = vector.load %arg5[%c0_6, %c0_7] : memref<1x128xf32, #tpu.memory_space<vmem>>, vector<1x128xf32>
    %cst = arith.constant dense<0.000000e+00> : vector<128x128xf32>
    %8 = tpu.matmul %4, %6, %cst {dimension_numbers = #tpu.dot_dimension_numbers<[1], [0], [0], [1], [0, 0, 1, 1], [], []>} : vector<128x128xbf16>, vector<128x128xbf16>, vector<128x128xf32> -> vector<128x128xf32>
    %cst_8 = arith.constant 1.000000e+01 : f32
    %9 = vector.broadcast %cst_8 : f32 to vector<128x128xf32>
    %10 = arith.mulf %8, %9 : vector<128x128xf32>
    %11 = vector.broadcast %7 : vector<1x128xf32> to vector<128x128xf32>
    %12 = arith.addf %10, %11 : vector<128x128xf32>
    %c0_9 = arith.constant 0 : index
    %c0_10 = arith.constant 0 : index
    %13 = vector.load %arg8[%c0_9, %c0_10] : memref<128x1xf32, #tpu.memory_space<vmem>>, vector<128x1xf32>
    %cst_11 = arith.constant dense<0xFF800000> : vector<128xf32>
    %14 = vector.multi_reduction <maximumf>, %12, %cst_11 [1] : vector<128x128xf32> to vector<128xf32>
    %15 = vector.shape_cast %14 : vector<128xf32> to vector<128x1xf32>
    %16 = arith.maximumf %13, %15 : vector<128x1xf32>
    %17 = arith.subf %13, %16 : vector<128x1xf32>
    %18 = math.exp %17 : vector<128x1xf32>
    %19 = vector.broadcast %16 : vector<128x1xf32> to vector<128x128xf32>
    %20 = arith.subf %12, %19 : vector<128x128xf32>
    %21 = math.exp %20 : vector<128x128xf32>
    %c0_12 = arith.constant 0 : index
    %c0_13 = arith.constant 0 : index
    %22 = vector.load %arg9[%c0_12, %c0_13] : memref<128x1xf32, #tpu.memory_space<vmem>>, vector<128x1xf32>
    %23 = arith.mulf %18, %22 : vector<128x1xf32>
    %cst_14 = arith.constant dense<0.000000e+00> : vector<128xf32>
    %24 = vector.multi_reduction <add>, %21, %cst_14 [1] : vector<128x128xf32> to vector<128xf32>
    %25 = vector.shape_cast %24 : vector<128xf32> to vector<128x1xf32>
    %26 = arith.addf %23, %25 : vector<128x1xf32>
    %c0_15 = arith.constant 0 : index
    %c0_16 = arith.constant 0 : index
    %27 = vector.load %arg9[%c0_15, %c0_16] : memref<128x1xf32, #tpu.memory_space<vmem>>, vector<128x1xf32>
    tpu.vector_store %arg9[%c0_15, %c0_16], %26 {strides = array<i32>} : memref<128x1xf32, #tpu.memory_space<vmem>>, vector<128x1xf32>,
    %c0_17 = arith.constant 0 : index
    %c0_18 = arith.constant 0 : index
    %28 = vector.load %arg10[%c0_17, %c0_18] : memref<128x128xf32, #tpu.memory_space<vmem>>, vector<128x128xf32>
    %29 = vector.broadcast %18 : vector<128x1xf32> to vector<128x128xf32>
    %30 = arith.mulf %29, %28 : vector<128x128xf32>
    %31 = arith.truncf %21 : vector<128x128xf32> to vector<128x128xbf16>
    %c0_19 = arith.constant 0 : index
    %c0_20 = arith.constant 0 : index
    %c0_21 = arith.constant 0 : index
    %32 = vector.load %arg6[%c0_19, %c0_20, %c0_21] : memref<1x128x128xbf16, #tpu.memory_space<vmem>>, vector<1x128x128xbf16>
    %33 = vector.shape_cast %32 : vector<1x128x128xbf16> to vector<128x128xbf16>
    %cst_22 = arith.constant dense<0.000000e+00> : vector<128x128xf32>
    %34 = tpu.matmul %31, %33, %cst_22 {dimension_numbers = #tpu.dot_dimension_numbers<[1], [0], [0], [1], [0, 0, 1, 1], [], []>} : vector<128x128xbf16>, vector<128x128xbf16>, vector<128x128xf32> -> vector<128x128xf32>
    %35 = arith.addf %30, %34 : vector<128x128xf32>
    %c0_23 = arith.constant 0 : index
    %c0_24 = arith.constant 0 : index
    %36 = vector.load %arg10[%c0_23, %c0_24] : memref<128x128xf32, #tpu.memory_space<vmem>>, vector<128x128xf32>
    tpu.vector_store %arg10[%c0_23, %c0_24], %35 {strides = array<i32>} : memref<128x128xf32, #tpu.memory_space<vmem>>, vector<128x128xf32>,
    %c0_25 = arith.constant 0 : index
    %c0_26 = arith.constant 0 : index
    %37 = vector.load %arg8[%c0_25, %c0_26] : memref<128x1xf32, #tpu.memory_space<vmem>>, vector<128x1xf32>
    tpu.vector_store %arg8[%c0_25, %c0_26], %16 {strides = array<i32>} : memref<128x1xf32, #tpu.memory_space<vmem>>, vector<128x1xf32>,
    %c0_i32_27 = arith.constant 0 : i32
    %38 = arith.cmpi eq, %arg2, %c0_i32_27 : i32
    %39 = arith.extui %38 : i1 to i32
    %c0_i32_28 = arith.constant 0 : i32
    %40 = arith.cmpi ne, %39, %c0_i32_28 : i32
    scf.if %40 {
      %c0_29 = arith.constant 0 : index
      %c0_30 = arith.constant 0 : index
      %41 = vector.load %arg10[%c0_29, %c0_30] : memref<128x128xf32, #tpu.memory_space<vmem>>, vector<128x128xf32>
      %c0_31 = arith.constant 0 : index
      %c0_32 = arith.constant 0 : index
      %42 = vector.load %arg9[%c0_31, %c0_32] : memref<128x1xf32, #tpu.memory_space<vmem>>, vector<128x1xf32>
      %43 = tpu.reciprocal %42 {approx = true} : vector<128x1xf32> -> vector<128x1xf32>
      %44 = vector.broadcast %43 : vector<128x1xf32> to vector<128x128xf32>
      %45 = arith.mulf %41, %44 : vector<128x128xf32>
      %c0_33 = arith.constant 0 : index
      %c0_34 = arith.constant 0 : index
      %c0_35 = arith.constant 0 : index
      %46 = vector.load %arg7[%c0_33, %c0_34, %c0_35] : memref<1x128x128xf32, #tpu.memory_space<vmem>>, vector<1x128x128xf32>
      %47 = vector.shape_cast %46 : vector<1x128x128xf32> to vector<128x128xf32>
      %48 = vector.shape_cast %45 : vector<128x128xf32> to vector<1x128x128xf32>
      tpu.vector_store %arg7[%c0_33, %c0_34, %c0_35], %48 {strides = array<i32>} : memref<1x128x128xf32, #tpu.memory_space<vmem>>, vector<1x128x128xf32>,
    } else {
    }
    return
  }
  func.func @transform_0(%arg0: i32, %arg1: i32, %arg2: i32) -> (i32, i32, i32) {
    %c0_i32 = arith.constant 0 : i32
    %c0_i32_0 = arith.constant 0 : i32
    return %arg0, %arg1, %c0_i32 : i32, i32, i32
  }
  func.func @transform_1(%arg0: i32, %arg1: i32, %arg2: i32) -> (i32, i32, i32) {
    %c0_i32 = arith.constant 0 : i32
    %c0_i32_0 = arith.constant 0 : i32
    return %arg0, %c0_i32, %arg2 : i32, i32, i32
  }
  func.func @transform_2(%arg0: i32, %arg1: i32, %arg2: i32) -> (i32, i32) {
    %c0_i32 = arith.constant 0 : i32
    %c0_i32_0 = arith.constant 0 : i32
    return %c0_i32, %arg2 : i32, i32
  }
  func.func @transform_3(%arg0: i32, %arg1: i32, %arg2: i32) -> (i32, i32, i32) {
    %c0_i32 = arith.constant 0 : i32
    %c0_i32_0 = arith.constant 0 : i32
    return %arg0, %arg2, %c0_i32 : i32, i32, i32
  }
  func.func @transform_4(%arg0: i32, %arg1: i32, %arg2: i32) -> (i32, i32, i32) {
    %c0_i32 = arith.constant 0 : i32
    %c0_i32_0 = arith.constant 0 : i32
    return %arg0, %arg1, %c0_i32 : i32, i32, i32
  }
}

</mosaic_0001>

<bundles_post_ra>
// kernel: tpu_custom_call.1
= control target key start
LH: loop header
LB: loop body
LE: loop exit
PB: predicated region body
PF: predicated region fallthrough
CT: control target
= control target key end

     0   :  { %s2874_s0 = inlined_call_operand.hbm [shape: bf16[2,128,128], index: 0, kind: input, shape index: {}]   ;;  %s2875_s1 = inlined_call_operand.hbm [shape: bf16[2,128,128], index: 1, kind: input, shape index: {}]   ;;  %s2876_s2 = inlined_call_operand.vmem [shape: f32[1,128], index: 2, kind: input, shape index: {}]   ;;  %s2877_s3 = inlined_call_operand.hbm [shape: bf16[2,128,128], index: 3, kind: input, shape index: {}]   ;;  %s2878_s4 = inlined_call_operand.hbm [shape: f32[2,128,128], index: 4, kind: output, shape index: {}]  }
   0x1   :  { %2885 = sst [smem:[#allocation19_spill]] %s2875_s1 }
   0x2   :  { %9 = vsyncpa [#allocation6], 0 }
   0x3   :  { %11 = vsyncpa [#allocation6 + $0x1], 0 }
   0x4   :  { %12 = vsyncpa [#allocation9], 0 }
   0x5   :  { %14 = vsyncpa [#allocation9 + $0x1], 0 }
   0x6   :  { %15 = vsyncpa [#allocation7], 0 }
   0x7   :  { %17 = vsyncpa [#allocation7 + $0x1], 0  ;;  %s2211_s15 = smov 0   ;;  %s2213_s16 = smov 0  }
   0x8   :  { %s2215_s17 = smov 0   ;;  %s2217_s18 = smov 0  }
   0x9   :  { %s2219_s19 = smov 0   ;;  %s2221_s20 = smov 0  }
   0xa LB: > { %2886 = sst [smem:[#allocation15_spill]] %s2169_s19  ;;  %s2242_s21 = sadd.s32 4294967295, %s2173_s20   ;;  %s2173_s20 = sphi %s2221_s20, %s23_s20   ;;  %s2169_s19 = sphi %s2219_s19, %s2917_s19   ;;  %s2165_s18 = sphi %s2217_s18, %s2916_s18   ;;  %s2161_s17 = sphi %s2215_s17, %s2920_s17   ;;  %s2157_s16 = sphi %s2213_s16, %s2919_s16   ;;  %s2153_s15 = sphi %s2211_s15, %s2918_s15  }
   0xb   : > { %s1656_s22 = sadd.s32 4294967294, %s2173_s20   ;;  %s42_s23 = sadd.s32 1, %s2169_s19 }
   0xc   : > { %s51_s24 = sadd.s32 1, %s2161_s17  ;;  %p44_p0 = scmp.ge.s32.totalorder %s42_s23, 2 }
   0xd   : > { %p58_p1 = scmp.ne.s32.totalorder %s2161_s17, %s2157_s16  ;;  %p59_p2 = scmp.eq.s32.totalorder %s2173_s20, 0 }
   0xe   : > { %p64_p3 = scmp.ne.s32.totalorder %s2157_s16, %s2153_s15  ;;  %s2922_s23 = smov (%p44_p0, %s42_s23), 0 }
   0xf   : > { %2887 = sst [smem:[#allocation16_spill]] %s2922_s23  ;;  %p2254_p4 = por %p59_p2, %p58_p1 }
  0x10   : > { %p65_p5 = scmp.eq.s32.totalorder %s2242_s21, 0  ;;  %s46_s26 = ssub.s32 %s2169_s19, %s2922_s23 }
  0x11   : > { %p172_p6 = scmp.eq.s32.totalorder %s2242_s21, 1  ;;  %p49_p7 = scmp.eq.s32.totalorder %s46_s26, 0 }
  0x12   : > { %p2262_p8 = por %p65_p5, %p64_p3  ;;  %p178_p10 = scmp.eq.s32.totalorder %s1656_s22, 1 }
  0x13   : > { %p2266_p9 = por %p172_p6, %p58_p1  ;;  %p1826_p13 = scmp.lt.s32.totalorder %s2173_s20, 2 }
  0x14   : > { %s2271_s29 = scalar_select %p49_p7, %s2161_s17, %s51_s24  }
  0x15   : > { %p2273_p11 = por %p178_p10, %p64_p3  ;;  %s2879_s5 = sand.u32 1, %s2161_s17  }
  0x16   : > { %2891 = sst [smem:[#allocation17_spill]] %s2271_s29  ;;  %s2282_s6 = sshll.u32 %s2879_s5, 6 }
  0x17   : > { %s2892_s30 = scalar_select %p2273_p11, 1, 0 }
  0x18   : > { %s2285_s7 = sshll.u32 %s2169_s19, 10  ;;  %p2289_p0 = pnand %p1826_p13, %p2254_p4 }
  0x19   : > { %2893 = sst [smem:[#allocation18_spill]] %s2892_s30  ;;  %s227_s9 = sand.u32 1, %s2173_s20  }
  0x1a   : > { %s2895_s1 = sld [smem:[#allocation19_spill]]  ;;  %s231_s13 = scalar_lea.vmem [#allocation8], %s2282_s6 }
  0x1b   : > { %s239_s14 = sshll.u32 %s231_s13, 4  ;;  %p1669_p1 = scmp.ge.s32.totalorder %s2173_s20, 1  ;;  %s240_s14 = int_to_ptr.vmem [resolvable:$true] %s239_s14 }
  0x1c   : > { %p270_p2 = scmp.lt.s32.totalorder %s2173_s20, 3  ;;  %s2301_s22 = scalar_lea.sflag [#allocation9], %s227_s9 }
  0x1d   : > { %p2007_p3 = pneg %p2289_p0  ;;  %s2018_s24 = scalar_lea.vmem %s240_s14, 1024 }
  0x1e   : > { %p2019_p4 = scmp.ne.s32.totalorder %s240_s14, %s2018_s24  ;;  %s2175_s25 = smov [#allocation8]  }
  0x1f   : > { %s2023_s26 = sshll.u32 %s2175_s25, 4  ;;  %s2024_s26 = int_to_ptr.vmem [resolvable:$false] %s2023_s26 }
  0x20   : > { %s238_s12 = scalar_lea.hbm %s2895_s1, %s2285_s7  ;;  %p2021_p5 = pnand %p2019_p4, %p2007_p3 }
  0x21   : > { %s2025_s10 = scalar_lea.vmem %s2024_s26, 2048  ;;  %p2026_p7 = scmp.lt.s32.totalorder %s240_s14, %s2024_s26 }
  0x22   : > { %p2022_p6 = pneg %p2021_p5  ;;  %p2027_p10 = scmp.lt.s32.totalorder %s2025_s10, %s2018_s24 }
  0x24   : > { %p2028_p13 = por %p2027_p10, %p2026_p7 }
  0x26   : > { %p2029_p12 = pnand %p2028_p13, %p2022_p6 }
  0x28   : > { %2032 = shalt.err (!%p2029_p12)
}
  0x29   : > { %s2883_s11 = smov 64   ;;  %s2177_s9 = smov 4  }
  0x2a   : > { %1818 = dma.hbm_to_vmem [thread:$0]  (!%p2289_p0), %s238_s12, 1024, %s240_s14, %s2301_s22, %s2883_s11, %s2883_s11, %s2177_s9  }
  0x2b   : > { %p2318_p4 = pnand %p1669_p1, %p270_p2  ;;  %s216_s26 = scalar_lea.hbm %s2874_s0, %s2285_s7 }
  0x2c   : > { %s208_s10 = scalar_lea.vmem [#allocation5], %s2282_s6  ;;  %s261_s19 = scalar_lea.hbm %s2877_s3, %s2285_s7 }
  0x2d   : > { %s217_s5 = sshll.u32 %s208_s10, 4  ;;  %s2897_s29 = sand.u32 1, %s2161_s17   ;;  %s218_s5 = int_to_ptr.vmem [resolvable:$true] %s217_s5 }
  0x2e   : > { %s205_s30 = scalar_lea.sflag [#allocation6], %s2897_s29  ;;  %s2046_s12 = scalar_lea.vmem %s218_s5, 1024 }
  0x2f   : > { %p2047_p12 = scmp.ne.s32.totalorder %s218_s5, %s2046_s12  ;;  %s2178_s14 = smov [#allocation5]  }
  0x30   : > { %s2051_s11 = sshll.u32 %s2178_s14, 4  ;;  %s2052_s11 = int_to_ptr.vmem [resolvable:$false] %s2051_s11 }
  0x31   : > { %p2049_p1 = pnand %p2047_p12, %p2007_p3  ;;  %s2053_s24 = scalar_lea.vmem %s2052_s11, 2048 }
  0x32   : > { %p2054_p5 = scmp.lt.s32.totalorder %s218_s5, %s2052_s11  ;;  %p2055_p6 = scmp.lt.s32.totalorder %s2053_s24, %s2046_s12 }
  0x33   : > { %p2050_p2 = pneg %p2049_p1 }
  0x34   : > { %p2056_p7 = por %p2055_p6, %p2054_p5 }
  0x36   : > { %p2057_p10 = pnand %p2056_p7, %p2050_p2 }
  0x38   : > { %2060 = shalt.err (!%p2057_p10)
}
  0x39   : > { %s2898_s1 = smov 64   ;;  %s253_s23 = scalar_lea.vmem [#allocation10], %s2282_s6 }
  0x3a   : > { %1815 = dma.hbm_to_vmem [thread:$0]  (!%p2289_p0), %s216_s26, 1024, %s218_s5, %s205_s30, %s2898_s1, %s2898_s1, %s2177_s9  }
  0x3b   : > { %s262_s29 = sshll.u32 %s253_s23, 4  ;;  %s2179_s11 = smov [#allocation10]   ;;  %s263_s29 = int_to_ptr.vmem [resolvable:$true] %s262_s29 }
  0x3c   : > { %s2074_s25 = scalar_lea.vmem %s263_s29, 1024  ;;  %s2079_s10 = sshll.u32 %s2179_s11, 4  ;;  %s2080_s10 = int_to_ptr.vmem [resolvable:$false] %s2079_s10 }
  0x3d   : > { %p2075_p13 = scmp.ne.s32.totalorder %s263_s29, %s2074_s25  ;;  %s2081_s12 = scalar_lea.vmem %s2080_s10, 2048 }
  0x3e   : > { %p2082_p2 = scmp.lt.s32.totalorder %s263_s29, %s2080_s10  ;;  %p2083_p5 = scmp.lt.s32.totalorder %s2081_s12, %s2074_s25 }
  0x3f   : > { %p2077_p12 = pnand %p2075_p13, %p2007_p3 }
  0x40   : > { %p2084_p6 = por %p2083_p5, %p2082_p2 }
  0x41   : > { %p2078_p1 = pneg %p2077_p12 }
  0x43   : > { %p2085_p7 = pnand %p2084_p6, %p2078_p1 }
  0x45   : > { %2088 = shalt.err (!%p2085_p7)
}
  0x46   : > { %1821 = dma.hbm_to_vmem [thread:$0]  (!%p2289_p0), %s261_s19, 1024, %s263_s29, %s2301_s22, %s2898_s1, %s2898_s1, %s2177_s9  }
  0x47   : > { %274 = sbr.rel (%p2318_p4) target bundleno = 944 (0x3b0), region = 36  ;;  %s2359_s6 = sand.u32 (!%p2318_p4), 1, %s2157_s16  }
  0x48   : > { %s2362_s8 = sshll.u32 (!%p2318_p4), %s2359_s6, 6  ;;  %s277_s26 = scalar_lea.sflag (!%p2318_p4), [#allocation6], %s2359_s6 }
  0x49   : > { %s2366_s14 = scalar_lea.vmem (!%p2318_p4), [#allocation5], %s2362_s8 }
  0x4c   : > { %2140 = dma.done.wait (%p2262_p8), %s277_s26, 1024  }
  0x4d   : > { %2142 = vsyncadd (%p2262_p8), %s277_s26, 4294966272  ;;  %s285_s19 = sand.u32 1, %s2242_s21   ;;  %s289_s22 = scalar_lea.vmem [#allocation8], %s2362_s8 }
  0x4e   : > { %s286_s7 = scalar_lea.sflag [#allocation9], %s285_s19 }
  0x4f   : > { %2144 = dma.done.wait (%p2262_p8), %s286_s7, 2048  }
  0x50   : > { %2146 = vsyncadd (%p2262_p8), %s286_s7, 4294965248  ;;  %v1885_v0 = vld [vmem:[%s289_s22 + $0x38] sm:$0xff]   ;;  %v1886_v1 = vld [vmem:[%s289_s22 + $0x30] sm:$0xff]   ;;  %vm347_vm0 = vcmask 7168   ;;  %v2180_v16 = vmov -1e+30  }
  0x51   : > { %1740 = vmatprep.subr.bf16.mxu0 %v1885_v0  ;;  %v1887_v2 = vld [vmem:[%s289_s22 + $0x28] sm:$0xff]   ;;  %v1888_v3 = vld [vmem:[%s289_s22 + $0x20] sm:$0xff]   ;;  %v1889_v5 = vld [vmem:[%s289_s22 + $0x18] sm:$0xff]   ;;  %350 = vst.msk [vmem:[#allocation2 + $0x10] sm:$0xff] %vm347_vm0, %v2180_v16  ;;  %v2181_v41 = vmov 0   ;;  %v2182_v59 = vmov 0.0  }
  0x52   : > { %1741 = vmatpush3.bf16.msra.mxu0 %v1885_v0  ;;  %v1893_v4 = vld [vmem:[%s2366_s14] sm:$0xff]   ;;  %v1890_v6 = vld [vmem:[%s289_s22 + $0x10] sm:$0xff]   ;;  %v1891_v7 = vld [vmem:[%s289_s22 + $0x8] sm:$0xff]   ;;  %348 = vst.msk [vmem:[#allocation2] sm:$0xff] %vm347_vm0, %v2180_v16  ;;  %1884 = vset.pattern.permute.xlu1 %v2181_v41  ;;  %s2488_s9 = scalar_lea.vmem [#allocation10], %s2362_s8  ;;  %s1673_s13 = sshll.u32 %s2359_s6, 7 }
  0x53   : > { %1742 = vmatprep.subr.bf16.mxu0 %v1886_v1  ;;  %1756 = vmatprep.mubr.bf16.mxu0 %v1893_v4  ;;  %v1892_v8 = vld [vmem:[%s289_s22] sm:$0xff]   ;;  %v1894_v9 = vld [vmem:[%s2366_s14 + $0x8] sm:$0xff]   ;;  %v1895_v10 = vld [vmem:[%s2366_s14 + $0x10] sm:$0xff]   ;;  %349 = vst.msk [vmem:[#allocation2 + $0x8] sm:$0xff] %vm347_vm0, %v2180_v16  ;;  %s2795_s24 = scalar_lea.vmem [#allocation11], %s1673_s13  ;;  %s1707_s1 = sshll.u32 %s2165_s18, 11 }
  0x54   : > { %v1896_v11 = vld [vmem:[%s2366_s14 + $0x18] sm:$0xff]   ;;  %v1897_v12 = vld [vmem:[%s2366_s14 + $0x20] sm:$0xff]   ;;  %v1898_v13 = vld [vmem:[%s2366_s14 + $0x28] sm:$0xff]   ;;  %351 = vst.msk [vmem:[#allocation2 + $0x18] sm:$0xff] %vm347_vm0, %v2180_v16  ;;  %1883 = vset.pattern.permute.xlu0 %v2181_v41  ;;  %s1505_s23 = sshll.u32 %s2795_s24, 4  ;;  %s2823_s11 = scalar_lea.hbm %s2878_s4, %s1707_s1  ;;  %s2825_s23 = int_to_ptr.vmem [resolvable:$true] %s1505_s23 }
  0x55   : > { %v1899_v14 = vld [vmem:[%s2366_s14 + $0x30] sm:$0xff]   ;;  %v1900_v15 = vld [vmem:[%s2366_s14 + $0x38] sm:$0xff]   ;;  %352 = vst.msk [vmem:[#allocation2 + $0x20] sm:$0xff] %vm347_vm0, %v2180_v16  ;;  %353 = vst.msk [vmem:[#allocation2 + $0x28] sm:$0xff] %vm347_vm0, %v2180_v16  ;;  %s1490_s10 = scalar_lea.sflag [#allocation7], %s2359_s6  ;;  %s2089_s18 = scalar_lea.vmem %s2825_s23, 2048 }
  0x56   : > { %1743 = vmatpush3.bf16.msra.mxu0 %v1886_v1  ;;  %354 = vst.msk [vmem:[#allocation2 + $0x30] sm:$0xff] %vm347_vm0, %v2180_v16  ;;  %355 = vst.msk [vmem:[#allocation2 + $0x38] sm:$0xff] %vm347_vm0, %v2180_v16  ;;  %v2405_v18 = vld [vmem:[%s2876_s2] ss:$0 sm:$0xff]  ;;  %v1901_v4 = vld [vmem:[%s2488_s9 + $0x38] sm:$0xff]   ;;  %p2090_p8 = scmp.ne.s32.totalorder %s2825_s23, %s2089_s18  ;;  %s2183_s12 = smov [#allocation11]  }
  0x57   : > { %1744 = vmatprep.subr.bf16.mxu0 %v1887_v2  ;;  %356 = vst.msk [vmem:[#allocation2 + $0x40] sm:$0xff] %vm347_vm0, %v2180_v16  ;;  %357 = vst.msk [vmem:[#allocation2 + $0x48] sm:$0xff] %vm347_vm0, %v2180_v16  ;;  %1772 = vmatprep.subr.bf16.mxu1 %v1901_v4  ;;  %v1906_v41 = vld [vmem:[%s2488_s9 + $0x10] sm:$0xff]   ;;  %s2093_s30 = sshll.u32 %s2183_s12, 4  ;;  %s2094_s30 = int_to_ptr.vmem [resolvable:$false] %s2093_s30 }
  0x58   : > { %358 = vst.msk [vmem:[#allocation2 + $0x50] sm:$0xff] %vm347_vm0, %v2180_v16  ;;  %359 = vst.msk [vmem:[#allocation2 + $0x58] sm:$0xff] %vm347_vm0, %v2180_v16  ;;  %1773 = vmatpush3.bf16.msra.mxu1 %v1901_v4  ;;  %p2091_p0 = pnand %p2090_p8, %p2266_p9  ;;  %s2095_s5 = scalar_lea.vmem %s2094_s30, 4096 }
  0x59   : > { %360 = vst.msk [vmem:[#allocation2 + $0x60] sm:$0xff] %vm347_vm0, %v2180_v16  ;;  %361 = vst.msk [vmem:[#allocation2 + $0x68] sm:$0xff] %vm347_vm0, %v2180_v16  ;;  %p2096_p4 = scmp.lt.s32.totalorder %s2825_s23, %s2094_s30  ;;  %p2097_p10 = scmp.lt.s32.totalorder %s2095_s5, %s2089_s18 }
  0x5a   : > { %1745 = vmatpush3.bf16.msra.mxu0 %v1887_v2  ;;  %362 = vst.msk [vmem:[#allocation2 + $0x70] sm:$0xff] %vm347_vm0, %v2180_v16  ;;  %363 = vst.msk [vmem:[#allocation2 + $0x78] sm:$0xff] %vm347_vm0, %v2180_v16  ;;  %v2510_v16 = vld [vmem:[#allocation2 + $0x8] sm:$0xff]  ;;  %p2092_p3 = pneg %p2091_p0 }
  0x5b   : > { %1746 = vmatprep.subr.bf16.mxu0 %v1888_v3  ;;  %366 = vst.msk [vmem:[#allocation3 + $0x10] sm:$0xff] %vm347_vm0, %v2182_v59  ;;  %364 = vst.msk [vmem:[#allocation3] sm:$0xff] %vm347_vm0, %v2182_v59  ;;  %p2098_p13 = por %p2097_p10, %p2096_p4 }
  0x5c   : > { %365 = vst.msk [vmem:[#allocation3 + $0x8] sm:$0xff] %vm347_vm0, %v2182_v59  ;;  %367 = vst.msk [vmem:[#allocation3 + $0x18] sm:$0xff] %vm347_vm0, %v2182_v59 }
  0x5d   : > { %368 = vst.msk [vmem:[#allocation3 + $0x20] sm:$0xff] %vm347_vm0, %v2182_v59  ;;  %369 = vst.msk [vmem:[#allocation3 + $0x28] sm:$0xff] %vm347_vm0, %v2182_v59  ;;  %p2099_p12 = pnand %p2098_p13, %p2092_p3 }
  0x5e   : > { %1747 = vmatpush3.bf16.msra.mxu0 %v1888_v3  ;;  %370 = vst.msk [vmem:[#allocation3 + $0x30] sm:$0xff] %vm347_vm0, %v2182_v59  ;;  %371 = vst.msk [vmem:[#allocation3 + $0x38] sm:$0xff] %vm347_vm0, %v2182_v59  ;;  %v2591_v4 = vld [vmem:[#allocation2 + $0x48] sm:$0xff] }
  0x5f   : > { %1748 = vmatprep.subr.bf16.mxu0 %v1889_v5  ;;  %372 = vst.msk [vmem:[#allocation3 + $0x40] sm:$0xff] %vm347_vm0, %v2182_v59  ;;  %373 = vst.msk [vmem:[#allocation3 + $0x48] sm:$0xff] %vm347_vm0, %v2182_v59 }
  0x60   : > { %374 = vst.msk [vmem:[#allocation3 + $0x50] sm:$0xff] %vm347_vm0, %v2182_v59  ;;  %375 = vst.msk [vmem:[#allocation3 + $0x58] sm:$0xff] %vm347_vm0, %v2182_v59 }
  0x61   : > { %376 = vst.msk [vmem:[#allocation3 + $0x60] sm:$0xff] %vm347_vm0, %v2182_v59  ;;  %377 = vst.msk [vmem:[#allocation3 + $0x68] sm:$0xff] %vm347_vm0, %v2182_v59 }
  0x62   : > { %1749 = vmatpush3.bf16.msra.mxu0 %v1889_v5  ;;  %378 = vst.msk [vmem:[#allocation3 + $0x70] sm:$0xff] %vm347_vm0, %v2182_v59  ;;  %379 = vst.msk [vmem:[#allocation3 + $0x78] sm:$0xff] %vm347_vm0, %v2182_v59  ;;  %v2491_v5 = vld [vmem:[#allocation2 + $0x10] sm:$0xff] }
  0x63   : > { %1750 = vmatprep.subr.bf16.mxu0 %v1890_v6 }
  0x66   : > { %1751 = vmatpush3.bf16.msra.mxu0 %v1890_v6  ;;  %v1902_v6 = vld [vmem:[%s2488_s9 + $0x30] sm:$0xff]  }
  0x67   : > { %1752 = vmatprep.subr.bf16.mxu0 %v1891_v7  ;;  %1774 = vmatprep.subr.bf16.mxu1 %v1902_v6 }
  0x68   : > { %1775 = vmatpush3.bf16.msra.mxu1 %v1902_v6  ;;  %v1908_v6 = vld [vmem:[%s2488_s9] sm:$0xff]  }
  0x6a   : > { %1753 = vmatpush3.bf16.msra.mxu0 %v1891_v7 }
  0x6b   : > { %1754 = vmatprep.subr.bf16.mxu0 %v1892_v8 }
  0x6e   : > { %1755 = vmatpush3.bf16.msra.mxu0 %v1892_v8  ;;  %v2494_v8 = vld [vmem:[#allocation2] sm:$0xff] }
  0x71   : > { %1757 = vmatmul.mubr.bf16.vlgmr.msra.gmra.mxu0 %v1894_v9 }
  0x72   : > { %1760 = vmatprep.mubr.bf16.mxu0 %v1895_v10 }
  0x79   : > { %1761 = vmatmul.mubr.bf16.gmra.mxu0 %v1896_v11  ;;  %v2499_v11 = vld [vmem:[#allocation2 + $0x18] sm:$0xff] }
  0x7a   : > { %1764 = vmatprep.mubr.bf16.mxu0 %v1897_v12  ;;  %v1903_v12 = vld [vmem:[%s2488_s9 + $0x28] sm:$0xff]  }
  0x7b   : > { %1776 = vmatprep.subr.bf16.mxu1 %v1903_v12 }
  0x7c   : > { %1777 = vmatpush3.bf16.msra.mxu1 %v1903_v12 }
  0x81   : > { %1765 = vmatmul.mubr.bf16.gmra.mxu0 %v1898_v13 }
  0x82   : > { %1768 = vmatprep.mubr.bf16.mxu0 %v1899_v14 }
  0x89   : > { %1769 = vmatmul.mubr.bf16.gmra.mxu0 %v1900_v15 }
 0x131   : > { %v1758_v17 = vpop.f32.mrf.mxu0 }
 0x132   : > { %v624_v19 = vmul.f32 10.0, %v1758_v17 }
 0x133   : > { %v559_v20 = vpop.f32.mrf.mxu0 }
 0x134   : > { %v622_v21 = vmul.f32 10.0, %v559_v20  ;;  %v2408_v22 = vadd.f32 %v2405_v18, %v624_v19  ;;  %v1904_v20 = vld [vmem:[%s2488_s9 + $0x20] sm:$0xff]  }
 0x135   : > { %v1759_v23 = vpop.f32.mrf.mxu0  ;;  %1778 = vmatprep.subr.bf16.mxu1 %v1904_v20 }
 0x136   : > { %v625_v24 = vmul.f32 10.0, %v1759_v23  ;;  %680 = vmax.xlane.f32.xlu1 %v2408_v22  ;;  %v2412_v25 = vadd.f32 %v2405_v18, %v622_v21  ;;  %1779 = vmatpush3.bf16.msra.mxu1 %v1904_v20 }
 0x137   : > { %v562_v26 = vpop.f32.mrf.mxu0 }
 0x138   : > { %v623_v27 = vmul.f32 10.0, %v562_v26  ;;  %676 = vmax.xlane.f32.xlu0 %v2412_v25  ;;  %v2416_v28 = vadd.f32 %v2405_v18, %v625_v24  ;;  %v2529_v24 = vld [vmem:[#allocation2 + $0x20] sm:$0xff] }
 0x139   : > { %v1762_v29 = vpop.f32.mrf.mxu0 }
 0x13a   : > { %682 = vmax.xlane.f32.xlu1 %v2416_v28  ;;  %v2420_v30 = vadd.f32 %v2405_v18, %v623_v27  ;;  %v628_v34 = vmul.f32 10.0, %v1762_v29  ;;  %v2535_v29 = vld [vmem:[#allocation2 + $0x38] sm:$0xff] }
 0x13b   : > { %v575_v31 = vpop.f32.mrf.mxu0 }
 0x13c   : > { %v626_v32 = vmul.f32 10.0, %v575_v31  ;;  %678 = vmax.xlane.f32.xlu0 %v2420_v30  ;;  %v2432_v42 = vadd.f32 %v2405_v18, %v628_v34  ;;  %v1905_v31 = vld [vmem:[%s2488_s9 + $0x18] sm:$0xff]   ;;  %v2542_v34 = vld [vmem:[#allocation2 + $0x30] sm:$0xff] }
 0x13d   : > { %v1763_v33 = vpop.f32.mrf.mxu0  ;;  %1780 = vmatprep.subr.bf16.mxu1 %v1905_v31 }
 0x13e   : > { %v629_v35 = vmul.f32 10.0, %v1763_v33  ;;  %v2424_v36 = vadd.f32 %v2405_v18, %v626_v32  ;;  %1781 = vmatpush3.bf16.msra.mxu1 %v1905_v31  ;;  %v2611_v31 = vld [vmem:[#allocation2 + $0x78] sm:$0xff] }
 0x13f   : > { %v578_v37 = vpop.f32.mrf.mxu0  ;;  %1782 = vmatprep.subr.bf16.mxu1 %v1906_v41 }
 0x140   : > { %v627_v38 = vmul.f32 10.0, %v578_v37  ;;  %684 = vmax.xlane.f32.xlu0 %v2424_v36  ;;  %v2428_v39 = vadd.f32 %v2405_v18, %v629_v35 }
 0x141   : > { %v1766_v40 = vpop.f32.mrf.mxu0 }
 0x142   : > { %690 = vmax.xlane.f32.xlu1 %v2428_v39  ;;  %v632_v44 = vmul.f32 10.0, %v1766_v40  ;;  %v2436_v46 = vadd.f32 %v2405_v18, %v627_v38  ;;  %v2551_v40 = vld [vmem:[#allocation2 + $0x28] sm:$0xff]  ;;  %1783 = vmatpush3.bf16.msra.mxu1 %v1906_v41 }
 0x143   : > { %v591_v43 = vpop.f32.mrf.mxu0 }
 0x144   : > { %v630_v45 = vmul.f32 10.0, %v591_v43  ;;  %688 = vmax.xlane.f32.xlu0 %v2432_v42  ;;  %v2447_v53 = vadd.f32 %v2405_v18, %v632_v44 }
 0x145   : > { %v1767_v47 = vpop.f32.mrf.mxu0 }
 0x146   : > { %v633_v48 = vmul.f32 10.0, %v1767_v47  ;;  %686 = vmax.xlane.f32.xlu1 %v2436_v46  ;;  %v2440_v49 = vadd.f32 %v2405_v18, %v630_v45  ;;  %v2561_v47 = vld [vmem:[#allocation2 + $0x40] sm:$0xff] }
 0x147   : > { %v594_v50 = vpop.f32.mrf.mxu0 }
 0x148   : > { %v631_v51 = vmul.f32 10.0, %v594_v50  ;;  %692 = vmax.xlane.f32.xlu0 %v2440_v49  ;;  %v2444_v52 = vadd.f32 %v2405_v18, %v633_v48 }
 0x149   : > { %v1770_v54 = vpop.f32.mrf.mxu0 }
 0x14a   : > { %698 = vmax.xlane.f32.xlu1 %v2444_v52  ;;  %v636_v56 = vmul.f32 10.0, %v1770_v54  ;;  %v2452_v58 = vadd.f32 %v2405_v18, %v631_v51  ;;  %v2571_v54 = vld [vmem:[#allocation2 + $0x58] sm:$0xff] }
 0x14b   : > { %v607_v55 = vpop.f32.mrf.mxu0 }
 0x14c   : > { %v634_v57 = vmul.f32 10.0, %v607_v55  ;;  %696 = vmax.xlane.f32.xlu0 %v2447_v53  ;;  %v2479_v2 = vadd.f32 %v2405_v18, %v636_v56  ;;  %v1907_v55 = vld [vmem:[%s2488_s9 + $0x8] sm:$0xff]  }
 0x14d   : > { %v1771_v60 = vpop.f32.mrf.mxu0  ;;  %1784 = vmatprep.subr.bf16.mxu1 %v1907_v55 }
 0x14e   : > { %v637_v61 = vmul.f32 10.0, %v1771_v60  ;;  %694 = vmax.xlane.f32.xlu1 %v2452_v58  ;;  %v2472_v62 = vadd.f32 %v2405_v18, %v634_v57  ;;  %v2581_v60 = vld [vmem:[#allocation2 + $0x50] sm:$0xff]  ;;  %1785 = vmatpush3.bf16.msra.mxu1 %v1907_v55 }
 0x14f   : > { %v610_v63 = vpop.f32.mrf.mxu0  ;;  %1786 = vmatprep.subr.bf16.mxu1 %v1908_v6 }
 0x150   : > { %v635_v0 = vmul.f32 10.0, %v610_v63  ;;  %700 = vmax.xlane.f32.xlu0 %v2472_v62  ;;  %v2476_v1 = vadd.f32 %v2405_v18, %v637_v61 }
 0x152   : > { %706 = vmax.xlane.f32.xlu1 %v2476_v1  ;;  %v2484_v3 = vadd.f32 %v2405_v18, %v635_v0  ;;  %1787 = vmatpush3.bf16.msra.mxu1 %v1908_v6 }
 0x154   : > { %704 = vmax.xlane.f32.xlu0 %v2479_v2 }
 0x156   : > { %702 = vmax.xlane.f32.xlu1 %v2484_v3 }
 0x1bf   : > { %v681_v7 = vpop.xlane.xlu1 %680 }
 0x1c0   : > { %v2497_v9 = vmax.f32 %v2491_v5, %v681_v7 }
 0x1c1   : > { %v677_v10 = vpop.xlane.xlu0 %676 }
 0x1c2   : > { %v726_v13 = vsub.f32 %v2491_v5, %v2497_v9  ;;  %1312 = vst.msk [vmem:[#allocation2 + $0x10] sm:$0xff] %vm347_vm0, %v2497_v9  ;;  %v2507_v14 = vmax.f32 %v2494_v8, %v677_v10  ;;  %784 = vperm.xlu1 %1884, %v2497_v9  }
 0x1c3   : > { %v683_v15 = vpop.xlane.xlu1 %682 }
 0x1c4   : > { %1310 = vst.msk [vmem:[#allocation2] sm:$0xff] %vm347_vm0, %v2507_v14  ;;  %v2517_v18 = vmax.f32 %v2499_v11, %v683_v15  ;;  %774 = vperm.xlu0 %1883, %v2507_v14   ;;  %v2601_v15 = vld [vmem:[#allocation2 + $0x60] sm:$0xff] }
 0x1c5   : > { %v679_v19 = vpop.xlane.xlu0 %678 }
 0x1c6   : > { %1313 = vst.msk [vmem:[#allocation2 + $0x18] sm:$0xff] %vm347_vm0, %v2517_v18  ;;  %v2526_v23 = vmax.f32 %v2510_v16, %v679_v19  ;;  %789 = vperm.xlu1 %1884, %v2517_v18  }
 0x1c8   : > { %v725_v26 = vsub.f32 %v2510_v16, %v2526_v23  ;;  %1311 = vst.msk [vmem:[#allocation2 + $0x8] sm:$0xff] %vm347_vm0, %v2526_v23  ;;  %v2901_v16 = vsub.f32 %v2499_v11, %v2517_v18 }
 0x1c9   : > { %v685_v27 = vpop.xlane.xlu0 %684 }
 0x1ca   : > { %v2539_v32 = vmax.f32 %v2529_v24, %v685_v27  ;;  %779 = vperm.xlu1 %1884, %v2526_v23   ;;  %v746_v23 = vmul.f32 1.442695, %v2901_v16 }
 0x1cb   : > { %v691_v33 = vpop.xlane.xlu1 %690 }
 0x1cc   : > { %1314 = vst.msk [vmem:[#allocation2 + $0x20] sm:$0xff] %vm347_vm0, %v2539_v32  ;;  %v2549_v37 = vmax.f32 %v2535_v29, %v691_v33 }
 0x1cd   : > { %v689_v38 = vpop.xlane.xlu0 %688 }
 0x1ce   : > { %1317 = vst.msk [vmem:[#allocation2 + $0x38] sm:$0xff] %vm347_vm0, %v2549_v37  ;;  %v2559_v44 = vmax.f32 %v2542_v34, %v689_v38  ;;  %v2905_v11 = vsub.f32 %v2535_v29, %v2549_v37 }
 0x1cf   : > { %v687_v45 = vpop.xlane.xlu1 %686 }
 0x1d0   : > { %1316 = vst.msk [vmem:[#allocation2 + $0x30] sm:$0xff] %vm347_vm0, %v2559_v44  ;;  %v2568_v50 = vmax.f32 %v2551_v40, %v687_v45  ;;  %804 = vperm.xlu1 %1884, %v2559_v44   ;;  %v2621_v45 = vld [vmem:[#allocation2 + $0x70] sm:$0xff]  ;;  %v2902_v5 = vsub.f32 %v2542_v34, %v2559_v44  ;;  %v754_v18 = vmul.f32 1.442695, %v2905_v11  ;;  %v905_v11 = vld [vmem:[#allocation3 + $0x28] sm:$0xff] }
 0x1d1   : > { %v693_v51 = vpop.xlane.xlu0 %692 }
 0x1d2   : > { %1315 = vst.msk [vmem:[#allocation2 + $0x28] sm:$0xff] %vm347_vm0, %v2568_v50  ;;  %v2579_v57 = vmax.f32 %v2561_v47, %v693_v51  ;;  %v752_v9 = vmul.f32 1.442695, %v2902_v5 }
 0x1d3   : > { %v699_v59 = vpop.xlane.xlu1 %698 }
 0x1d4   : > { %1318 = vst.msk [vmem:[#allocation2 + $0x40] sm:$0xff] %vm347_vm0, %v2579_v57  ;;  %v2588_v63 = vmax.f32 %v2571_v54, %v699_v59  ;;  %794 = vperm.xlu1 %1884, %v2539_v32  }
 0x1d5   : > { %v697_v0 = vpop.xlane.xlu0 %696 }
 0x1d6   : > { %1321 = vst.msk [vmem:[#allocation2 + $0x58] sm:$0xff] %vm347_vm0, %v2588_v63  ;;  %v2599_v10 = vmax.f32 %v2581_v60, %v697_v0  ;;  %v2631_v0 = vld [vmem:[#allocation2 + $0x68] sm:$0xff] }
 0x1d7   : > { %v695_v12 = vpop.xlane.xlu1 %694 }
 0x1d8   : > { %1320 = vst.msk [vmem:[#allocation2 + $0x50] sm:$0xff] %vm347_vm0, %v2599_v10  ;;  %v2608_v20 = vmax.f32 %v2591_v4, %v695_v12  ;;  %799 = vperm.xlu1 %1884, %v2568_v50  }
 0x1d9   : > { %v701_v27 = vpop.xlane.xlu0 %700 }
 0x1da   : > { %1319 = vst.msk [vmem:[#allocation2 + $0x48] sm:$0xff] %vm347_vm0, %v2608_v20  ;;  %v2618_v38 = vmax.f32 %v2601_v15, %v701_v27  ;;  %819 = vperm.xlu0 %1883, %v2608_v20   ;;  %v2907_v44 = vsub.f32 %v2591_v4, %v2608_v20 }
 0x1db   : > { %v707_v41 = vpop.xlane.xlu1 %706 }
 0x1dc   : > { %1322 = vst.msk [vmem:[#allocation2 + $0x60] sm:$0xff] %vm347_vm0, %v2618_v38  ;;  %v2628_v55 = vmax.f32 %v2611_v31, %v707_v41  ;;  %809 = vperm.xlu1 %1884, %v2549_v37   ;;  %v2908_v29 = vsub.f32 %v2601_v15, %v2618_v38 }
 0x1dd   : > { %v705_v59 = vpop.xlane.xlu0 %704 }
 0x1de   : > { %1325 = vst.msk [vmem:[#allocation2 + $0x78] sm:$0xff] %vm347_vm0, %v2628_v55  ;;  %v2638_v12 = vmax.f32 %v2621_v45, %v705_v59  ;;  %829 = vperm.xlu0 %1883, %v2588_v63   ;;  %v764_v37 = vmul.f32 1.442695, %v2908_v29  ;;  %v910_v29 = vld [vmem:[#allocation3 + $0x50] sm:$0xff] }
 0x1df   : > { %v703_v27 = vpop.xlane.xlu1 %702 }
 0x1e0   : > { %1324 = vst.msk [vmem:[#allocation2 + $0x70] sm:$0xff] %vm347_vm0, %v2638_v12  ;;  %v2646_v7 = vmax.f32 %v2631_v0, %v703_v27  ;;  %814 = vperm.xlu1 %1884, %v2579_v57   ;;  %v2910_v4 = vsub.f32 %v2621_v45, %v2638_v12 }
 0x1e2   : > { %1323 = vst.msk [vmem:[#allocation2 + $0x68] sm:$0xff] %vm347_vm0, %v2646_v7  ;;  %839 = vperm.xlu0 %1883, %v2646_v7   ;;  %v768_v20 = vmul.f32 1.442695, %v2910_v4  ;;  %v2911_v15 = vsub.f32 %v2631_v0, %v2646_v7 }
 0x1e4   : > { %824 = vperm.xlu1 %1884, %v2599_v10  }
 0x1e6   : > { %849 = vperm.xlu0 %1883, %v2628_v55  }
 0x1e8   : > { %834 = vperm.xlu1 %1884, %v2618_v38   ;;  %v766_v38 = vmul.f32 1.442695, %v2911_v15 }
 0x1ec   : > { %844 = vperm.xlu1 %1884, %v2638_v12  }
 0x23d   : > { %v785_v59 = vpop.permute.xlu1 %784 }
 0x23e   : > { %v854_v27 = vsub.f32 %v2408_v22, %v785_v59 }
 0x23f   : > { %v775_v41 = vpop.permute.xlu0 %774 }
 0x240   : > { %v872_v51 = vmul.f32 1.442695, %v854_v27  ;;  %v852_v6 = vsub.f32 %v2412_v25, %v775_v41 }
 0x241   : > { %v790_v33 = vpop.permute.xlu1 %789 }
 0x242   : > { %1909 = vpow2.f32 %v872_v51  ;;  %v868_v19 = vmul.f32 1.442695, %v852_v6  ;;  %v855_v43 = vsub.f32 %v2416_v28, %v790_v33 }
 0x244   : > { %1911 = vpow2.f32 %v868_v19  ;;  %v874_v61 = vmul.f32 1.442695, %v855_v43 }
 0x245   : > { %v780_v56 = vpop.permute.xlu1 %779 }
 0x246   : > { %v853_v48 = vsub.f32 %v2420_v30, %v780_v56  ;;  %1913 = vpow2.f32 %v874_v61 }
 0x248   : > { %v870_v21 = vmul.f32 1.442695, %v853_v48 }
 0x24a   : > { %1915 = vpow2.f32 %v870_v21 }
 0x24b   : > { %v805_v35 = vpop.permute.xlu1 %804 }
 0x24c   : > { %v858_v22 = vsub.f32 %v2432_v42, %v805_v35 }
 0x24e   : > { %v880_v59 = vmul.f32 1.442695, %v858_v22 }
 0x24f   : > { %v1910_v27 = vpop.eup %1909  ;;  %v795_v17 = vpop.permute.xlu1 %794 }
 0x250   : > { %1917 = vpow2.f32 %v880_v59  ;;  %v856_v25 = vsub.f32 %v2424_v36, %v795_v17  ;;  %936 = vadd.xlane.f32.xlu0 %v1910_v27 }
 0x251   : > { %v1912_v51 = vpop.eup %1911 }
 0x252   : > { %v876_v28 = vmul.f32 1.442695, %v856_v25  ;;  %932 = vadd.xlane.f32.xlu1 %v1912_v51 }
 0x253   : > { %v800_v43 = vpop.permute.xlu1 %799  ;;  %v1914_v56 = vpop.eup %1913 }
 0x254   : > { %1919 = vpow2.f32 %v876_v28  ;;  %v857_v30 = vsub.f32 %v2436_v46, %v800_v43  ;;  %v1110_v33 = vpack.c.bf16 %v1914_v56, %v1910_v27 }
 0x255   : > { %v820_v48 = vpop.permute.xlu0 %819 }
 0x256   : > { %v878_v21 = vmul.f32 1.442695, %v857_v30  ;;  %938 = vadd.xlane.f32.xlu1 %v1914_v56  ;;  %v861_v42 = vsub.f32 %v2452_v58, %v820_v48 }
 0x257   : > { %v1916_v61 = vpop.eup %1915  ;;  %v810_v35 = vpop.permute.xlu1 %809 }
 0x258   : > { %1921 = vpow2.f32 %v878_v21  ;;  %v859_v19 = vsub.f32 %v2428_v39, %v810_v35  ;;  %934 = vadd.xlane.f32.xlu0 %v1916_v61  ;;  %v1109_v36 = vpack.c.bf16 %v1916_v61, %v1912_v51  ;;  %v886_v41 = vmul.f32 1.442695, %v861_v42 }
 0x259   : > { %v830_v17 = vpop.permute.xlu0 %829 }
 0x25a   : > { %v882_v6 = vmul.f32 1.442695, %v859_v19  ;;  %1788 = vmatprep.mubr.bf16.mxu1 %v1109_v36  ;;  %v863_v46 = vsub.f32 %v2444_v52, %v830_v17 }
 0x25b   : > { %v815_v22 = vpop.permute.xlu1 %814  ;;  %1789 = vmatmul.mubr.bf16.vlgmr.msra.gmra.mxu1 %v1110_v33 }
 0x25c   : > { %1923 = vpow2.f32 %v882_v6  ;;  %v860_v59 = vsub.f32 %v2440_v49, %v815_v22  ;;  %v890_v39 = vmul.f32 1.442695, %v863_v46 }
 0x25d   : > { %v1918_v25 = vpop.eup %1917  ;;  %v840_v58 = vpop.permute.xlu0 %839  ;;  %1925 = vpow2.f32 %v886_v41 }
 0x25e   : > { %v884_v28 = vmul.f32 1.442695, %v860_v59  ;;  %944 = vadd.xlane.f32.xlu0 %v1918_v25  ;;  %v865_v51 = vsub.f32 %v2484_v3, %v840_v58 }
 0x25f   : > { %v825_v43 = vpop.permute.xlu1 %824 }
 0x260   : > { %1927 = vpow2.f32 %v884_v28  ;;  %v862_v27 = vsub.f32 %v2447_v53, %v825_v43  ;;  %v894_v48 = vmul.f32 1.442695, %v865_v51  ;;  %v742_v43 = vmul.f32 1.442695, %v725_v26 }
 0x261   : > { %v1920_v30 = vpop.eup %1919  ;;  %v850_v56 = vpop.permute.xlu0 %849  ;;  %1929 = vpow2.f32 %v890_v39 }
 0x262   : > { %v888_v52 = vmul.f32 1.442695, %v862_v27  ;;  %940 = vadd.xlane.f32.xlu0 %v1920_v30  ;;  %v867_v49 = vsub.f32 %v2476_v1, %v850_v56  ;;  %v744_v27 = vmul.f32 1.442695, %v726_v13 }
 0x263   : > { %v835_v21 = vpop.permute.xlu1 %834 }
 0x264   : > { %1931 = vpow2.f32 %v888_v52  ;;  %v864_v61 = vsub.f32 %v2472_v62, %v835_v21  ;;  %v898_v3 = vmul.f32 1.442695, %v867_v49  ;;  %v2900_v52 = vsub.f32 %v2529_v24, %v2539_v32 }
 0x265   : > { %v1922_v42 = vpop.eup %1921  ;;  %1933 = vpow2.f32 %v894_v48  ;;  %v2906_v32 = vsub.f32 %v2581_v60, %v2599_v10  ;;  %v2909_v60 = vsub.f32 %v2571_v54, %v2588_v63  ;;  %v2912_v63 = vsub.f32 %v2611_v31, %v2628_v55 }
 0x266   : > { %v892_v35 = vmul.f32 1.442695, %v864_v61  ;;  %v1111_v19 = vpack.c.bf16 %v1922_v42, %v1920_v30  ;;  %v2899_v30 = vsub.f32 %v2494_v8, %v2507_v14  ;;  %v748_v48 = vmul.f32 1.442695, %v2900_v52 }
 0x267   : > { %v845_v36 = vpop.permute.xlu1 %844  ;;  %v2903_v8 = vsub.f32 %v2551_v40, %v2568_v50  ;;  %v2904_v14 = vsub.f32 %v2561_v47, %v2579_v57  ;;  %v760_v34 = vmul.f32 1.442695, %v2906_v32  ;;  %v758_v47 = vmul.f32 1.442695, %v2907_v44 }
 0x268   : > { %1935 = vpow2.f32 %v892_v35  ;;  %v866_v53 = vsub.f32 %v2479_v2, %v845_v36  ;;  %1792 = vmatprep.mubr.bf16.mxu1 %v1111_v19  ;;  %v740_v56 = vmul.f32 1.442695, %v2899_v30  ;;  %v762_v10 = vmul.f32 1.442695, %v2909_v60  ;;  %v900_v36 = vld [vmem:[#allocation3] sm:$0xff] }
 0x269   : > { %v1924_v17 = vpop.eup %1923  ;;  %1937 = vpow2.f32 %v898_v3  ;;  %v750_v13 = vmul.f32 1.442695, %v2903_v8  ;;  %v756_v24 = vmul.f32 1.442695, %v2904_v14  ;;  %v902_v3 = vld [vmem:[#allocation3 + $0x10] sm:$0xff]  ;;  %v907_v8 = vld [vmem:[#allocation3 + $0x38] sm:$0xff] }
 0x26a   : > { %v896_v33 = vmul.f32 1.442695, %v866_v53  ;;  %946 = vadd.xlane.f32.xlu1 %v1924_v17  ;;  %v1112_v6 = vpack.c.bf16 %v1924_v17, %v1918_v25  ;;  %v1926_v1 = vpop.eup %1925 }
 0x26c   : > { %1939 = vpow2.f32 %v896_v33  ;;  %1793 = vmatmul.mubr.bf16.gmra.mxu1 %v1112_v6 }
 0x26d   : > { %v1928_v41 = vpop.eup %1927  ;;  %1941 = vpow2.f32 %v742_v43 }
 0x26e   : > { %942 = vadd.xlane.f32.xlu1 %v1922_v42  ;;  %v1113_v62 = vpack.c.bf16 %v1926_v1, %v1928_v41  ;;  %v1930_v46 = vpop.eup %1929  ;;  %1943 = vpow2.f32 %v744_v27  ;;  %v770_v42 = vmul.f32 1.442695, %v2912_v63 }
 0x26f   : > { %1945 = vpow2.f32 %v740_v56  ;;  %v904_v56 = vld [vmem:[#allocation3 + $0x20] sm:$0xff] }
 0x270   : > { %1796 = vmatprep.mubr.bf16.mxu1 %v1113_v62  ;;  %1947 = vpow2.f32 %v748_v48 }
 0x271   : > { %v1932_v22 = vpop.eup %1931  ;;  %1949 = vpow2.f32 %v746_v23 }
 0x272   : > { %952 = vadd.xlane.f32.xlu0 %v1932_v22  ;;  %954 = vadd.xlane.f32.xlu1 %v1930_v46  ;;  %v1114_v59 = vpack.c.bf16 %v1930_v46, %v1932_v22  ;;  %v1934_v58 = vpop.eup %1933  ;;  %1951 = vpow2.f32 %v752_v9  ;;  %v901_v46 = vld [vmem:[#allocation3 + $0x8] sm:$0xff] }
 0x273   : > { %1953 = vpow2.f32 %v750_v13 }
 0x274   : > { %1797 = vmatmul.mubr.bf16.gmra.mxu1 %v1114_v59  ;;  %1955 = vpow2.f32 %v756_v24 }
 0x275   : > { %v1936_v2 = vpop.eup %1935  ;;  %1957 = vpow2.f32 %v754_v18 }
 0x276   : > { %948 = vadd.xlane.f32.xlu0 %v1928_v41  ;;  %950 = vadd.xlane.f32.xlu1 %v1926_v1  ;;  %v1115_v28 = vpack.c.bf16 %v1934_v58, %v1936_v2  ;;  %v1938_v25 = vpop.eup %1937  ;;  %1959 = vpow2.f32 %v760_v34  ;;  %v903_v41 = vld [vmem:[#allocation3 + $0x18] sm:$0xff] }
 0x277   : > { %1961 = vpow2.f32 %v758_v47 }
 0x278   : > { %1800 = vmatprep.mubr.bf16.mxu1 %v1115_v28  ;;  %1963 = vpow2.f32 %v764_v37 }
 0x279   : > { %v1940_v39 = vpop.eup %1939  ;;  %1965 = vpow2.f32 %v762_v10 }
 0x27a   : > { %956 = vadd.xlane.f32.xlu0 %v1936_v2  ;;  %962 = vadd.xlane.f32.xlu1 %v1938_v25  ;;  %v1116_v51 = vpack.c.bf16 %v1938_v25, %v1940_v39  ;;  %v2698_v26 = vpop.eup %1941  ;;  %1967 = vpow2.f32 %v768_v20  ;;  %v909_v20 = vld [vmem:[#allocation3 + $0x48] sm:$0xff] }
 0x27b   : > { %v1944_v40 = vpop.eup %1943  ;;  %1969 = vpow2.f32 %v766_v38  ;;  %v917_v2 = vmul.f32 %v2698_v26, %v901_v46  ;;  %v914_v46 = vld [vmem:[#allocation3 + $0x70] sm:$0xff] }
 0x27c   : > { %1801 = vmatmul.mubr.bf16.gmra.mxu1 %v1116_v51  ;;  %v1946_v50 = vpop.eup %1945  ;;  %1971 = vpow2.f32 %v770_v42  ;;  %v918_v53 = vmul.f32 %v1944_v40, %v902_v3  ;;  %v915_v3 = vld [vmem:[#allocation3 + $0x78] sm:$0xff] }
 0x27d   : > { %v2713_v57 = vpop.eup %1947  ;;  %v916_v6 = vmul.f32 %v1946_v50, %v900_v36  ;;  %v912_v36 = vld [vmem:[#allocation3 + $0x60] sm:$0xff] }
 0x27e   : > { %960 = vadd.xlane.f32.xlu0 %v1940_v39  ;;  %958 = vadd.xlane.f32.xlu1 %v1934_v58  ;;  %v1950_v49 = vpop.eup %1949  ;;  %v906_v39 = vld [vmem:[#allocation3 + $0x30] sm:$0xff]  ;;  %v920_v16 = vmul.f32 %v2713_v57, %v904_v56 }
 0x27f   : > { %v1952_v21 = vpop.eup %1951  ;;  %v919_v22 = vmul.f32 %v1950_v49, %v903_v41 }
 0x280   : > { %v2725_v61 = vpop.eup %1953  ;;  %v922_v27 = vmul.f32 %v1952_v21, %v906_v39 }
 0x281   : > { %v2728_v54 = vpop.eup %1955 }
 0x282   : > { %v1958_v45 = vpop.eup %1957 }
 0x283   : > { %v2734_v12 = vpop.eup %1959  ;;  %v923_v24 = vmul.f32 %v1958_v45, %v907_v8 }
 0x284   : > { %v2736_v7 = vpop.eup %1961  ;;  %v926_v60 = vmul.f32 %v2734_v12, %v910_v29 }
 0x285   : > { %v2740_v0 = vpop.eup %1963  ;;  %v925_v63 = vmul.f32 %v2736_v7, %v909_v20 }
 0x286   : > { %v2742_v35 = vpop.eup %1965 }
 0x287   : > { %v2746_v31 = vpop.eup %1967 }
 0x288   : > { %v2748_v55 = vpop.eup %1969 }
 0x289   : > { %v2752_v19 = vpop.eup %1971 }
 0x28f   : > { %1020 = vperm.xlu1 %1884, %v2698_v26  }
 0x293   : > { %1025 = vperm.xlu1 %1884, %v1944_v40   ;;  %v921_v40 = vmul.f32 %v2725_v61, %v905_v11 }
 0x294   : > { %1015 = vperm.xlu0 %1883, %v1946_v50   ;;  %v911_v50 = vld [vmem:[#allocation3 + $0x58] sm:$0xff] }
 0x297   : > { %1035 = vperm.xlu1 %1884, %v2713_v57   ;;  %v927_v57 = vmul.f32 %v2742_v35, %v911_v50 }
 0x298   : > { %1030 = vperm.xlu0 %1883, %v1950_v49  }
 0x29b   : > { %1045 = vperm.xlu1 %1884, %v1952_v21   ;;  %v908_v21 = vld [vmem:[#allocation3 + $0x40] sm:$0xff] }
 0x29c   : > { %1040 = vperm.xlu0 %1883, %v2725_v61   ;;  %v924_v42 = vmul.f32 %v2728_v54, %v908_v21 }
 0x29f   : > { %1055 = vperm.xlu1 %1884, %v2728_v54  }
 0x2a0   : > { %1050 = vperm.xlu0 %1883, %v1958_v45  }
 0x2a3   : > { %1065 = vperm.xlu1 %1884, %v2734_v12  }
 0x2a4   : > { %1060 = vperm.xlu0 %1883, %v2736_v7   ;;  %v928_v7 = vmul.f32 %v2740_v0, %v912_v36 }
 0x2a7   : > { %1075 = vperm.xlu1 %1884, %v2740_v0  }
 0x2a8   : > { %1070 = vperm.xlu0 %1883, %v2742_v35  }
 0x2ab   : > { %1085 = vperm.xlu1 %1884, %v2746_v31  }
 0x2ac   : > { %1080 = vperm.xlu0 %1883, %v2748_v55  }
 0x2b0   : > { %1090 = vperm.xlu0 %1883, %v2752_v19  }
 0x2d9   : > { %v937_v17 = vpop.xlane.xlu0 %936 }
 0x2da   : > { %v966_v33 = vadd.f32 %v937_v17, %v918_v53 }
 0x2db   : > { %v933_v1 = vpop.xlane.xlu1 %932 }
 0x2dc   : > { %983 = vst.msk [vmem:[#allocation3 + $0x10] sm:$0xff] %vm347_vm0, %v966_v33  ;;  %v964_v62 = vadd.f32 %v933_v1, %v916_v6  ;;  %v931_v6 = vmul.f32 %v2752_v19, %v915_v3  ;;  %v930_v19 = vmul.f32 %v2746_v31, %v914_v46 }
 0x2de   : > { %981 = vst.msk [vmem:[#allocation3] sm:$0xff] %vm347_vm0, %v964_v62  ;;  %v913_v62 = vld [vmem:[#allocation3 + $0x68] sm:$0xff] }
 0x2df   : > { %v939_v59 = vpop.xlane.xlu1 %938 }
 0x2e0   : > { %v967_v58 = vadd.f32 %v939_v59, %v919_v22 }
 0x2e1   : > { %v935_v28 = vpop.xlane.xlu0 %934 }
 0x2e2   : > { %984 = vst.msk [vmem:[#allocation3 + $0x18] sm:$0xff] %vm347_vm0, %v967_v58  ;;  %v965_v25 = vadd.f32 %v935_v28, %v917_v2  ;;  %v929_v28 = vmul.f32 %v2748_v55, %v913_v62 }
 0x2e3   : > { %v1347_v51 = vld [vmem:[#allocation3 + $0x10] sm:$0xff] }
 0x2e4   : > { %982 = vst.msk [vmem:[#allocation3 + $0x8] sm:$0xff] %vm347_vm0, %v965_v25  ;;  %1973 = vrcp.f32 %v1347_v51 }
 0x2e5   : > { %v1345_v43 = vld [vmem:[#allocation3] sm:$0xff] }
 0x2e6   : > { %1975 = vrcp.f32 %v1345_v43 }
 0x2e7   : > { %v945_v30 = vpop.xlane.xlu0 %944 }
 0x2e8   : > { %v970_v52 = vadd.f32 %v945_v30, %v922_v27 }
 0x2e9   : > { %v1348_v48 = vld [vmem:[#allocation3 + $0x18] sm:$0xff] }
 0x2ea   : > { %987 = vst.msk [vmem:[#allocation3 + $0x30] sm:$0xff] %vm347_vm0, %v970_v52  ;;  %1977 = vrcp.f32 %v1348_v48 }
 0x2eb   : > { %v941_v23 = vpop.xlane.xlu0 %940  ;;  %v1346_v5 = vld [vmem:[#allocation3 + $0x8] sm:$0xff] }
 0x2ec   : > { %v968_v9 = vadd.f32 %v941_v23, %v920_v16  ;;  %1979 = vrcp.f32 %v1346_v5 }
 0x2ee   : > { %985 = vst.msk [vmem:[#allocation3 + $0x20] sm:$0xff] %vm347_vm0, %v968_v9 }
 0x2f1   : > { %v1974_v13 = vpop.eup %1973  ;;  %v1351_v14 = vld [vmem:[#allocation3 + $0x30] sm:$0xff] }
 0x2f2   : > { %1389 = vperm.xlu1 %1884, %v1974_v13   ;;  %1981 = vrcp.f32 %v1351_v14 }
 0x2f3   : > { %v947_v26 = vpop.xlane.xlu1 %946  ;;  %v1976_v32 = vpop.eup %1975 }
 0x2f4   : > { %v971_v18 = vadd.f32 %v947_v26, %v923_v24 }
 0x2f5   : > { %v1349_v34 = vld [vmem:[#allocation3 + $0x20] sm:$0xff] }
 0x2f6   : > { %988 = vst.msk [vmem:[#allocation3 + $0x38] sm:$0xff] %vm347_vm0, %v971_v18  ;;  %1379 = vperm.xlu1 %1884, %v1976_v32   ;;  %1983 = vrcp.f32 %v1349_v34 }
 0x2f7   : > { %v1978_v44 = vpop.eup %1977  ;;  %v943_v47 = vpop.xlane.xlu1 %942 }
 0x2f8   : > { %v969_v37 = vadd.f32 %v943_v47, %v921_v40  ;;  %1394 = vperm.xlu0 %1883, %v1978_v44  }
 0x2f9   : > { %v1980_v10 = vpop.eup %1979 }
 0x2fa   : > { %986 = vst.msk [vmem:[#allocation3 + $0x28] sm:$0xff] %vm347_vm0, %v969_v37 }
 0x2fb   : > { %v955_v49 = vpop.xlane.xlu1 %954  ;;  %v953_v4 = vpop.xlane.xlu0 %952 }
 0x2fc   : > { %v975_v15 = vadd.f32 %v955_v49, %v927_v57  ;;  %v974_v38 = vadd.f32 %v953_v4, %v926_v60  ;;  %1384 = vperm.xlu0 %1883, %v1980_v10  }
 0x2fd   : > { %v1352_v61 = vld [vmem:[#allocation3 + $0x38] sm:$0xff] }
 0x2fe   : > { %992 = vst.msk [vmem:[#allocation3 + $0x58] sm:$0xff] %vm347_vm0, %v975_v15  ;;  %991 = vst.msk [vmem:[#allocation3 + $0x50] sm:$0xff] %vm347_vm0, %v974_v38  ;;  %1985 = vrcp.f32 %v1352_v61 }
 0x2ff   : > { %v1982_v45 = vpop.eup %1981  ;;  %v951_v12 = vpop.xlane.xlu1 %950 }
 0x300   : > { %v949_v35 = vpop.xlane.xlu0 %948  ;;  %v973_v53 = vadd.f32 %v951_v12, %v925_v63  ;;  %1409 = vperm.xlu1 %1884, %v1982_v45  }
 0x301   : > { %v972_v17 = vadd.f32 %v949_v35, %v924_v42  ;;  %v1350_v33 = vld [vmem:[#allocation3 + $0x28] sm:$0xff] }
 0x302   : > { %990 = vst.msk [vmem:[#allocation3 + $0x48] sm:$0xff] %vm347_vm0, %v973_v53  ;;  %1987 = vrcp.f32 %v1350_v33 }
 0x303   : > { %989 = vst.msk [vmem:[#allocation3 + $0x40] sm:$0xff] %vm347_vm0, %v972_v17  ;;  %v1984_v54 = vpop.eup %1983  ;;  %v963_v1 = vpop.xlane.xlu1 %962 }
 0x304   : > { %v957_v41 = vpop.xlane.xlu0 %956  ;;  %v979_v22 = vadd.f32 %v963_v1, %v931_v6  ;;  %1399 = vperm.xlu1 %1884, %v1984_v54  }
 0x305   : > { %v976_v59 = vadd.f32 %v957_v41, %v928_v7  ;;  %v1356_v58 = vld [vmem:[#allocation3 + $0x58] sm:$0xff]  ;;  %v1355_v2 = vld [vmem:[#allocation3 + $0x50] sm:$0xff] }
 0x306   : > { %996 = vst.msk [vmem:[#allocation3 + $0x78] sm:$0xff] %vm347_vm0, %v979_v22  ;;  %1989 = vrcp.f32 %v1356_v58 }
 0x307   : > { %993 = vst.msk [vmem:[#allocation3 + $0x60] sm:$0xff] %vm347_vm0, %v976_v59  ;;  %v959_v0 = vpop.xlane.xlu1 %958  ;;  %1991 = vrcp.f32 %v1355_v2 }
 0x308   : > { %v961_v25 = vpop.xlane.xlu0 %960  ;;  %v977_v39 = vadd.f32 %v959_v0, %v929_v28 }
 0x309   : > { %v978_v51 = vadd.f32 %v961_v25, %v930_v19  ;;  %v1354_v43 = vld [vmem:[#allocation3 + $0x48] sm:$0xff] }
 0x30a   : > { %v1353_v27 = vld [vmem:[#allocation3 + $0x40] sm:$0xff]  ;;  %994 = vst.msk [vmem:[#allocation3 + $0x68] sm:$0xff] %vm347_vm0, %v977_v39  ;;  %1993 = vrcp.f32 %v1354_v43 }
 0x30b   : > { %995 = vst.msk [vmem:[#allocation3 + $0x70] sm:$0xff] %vm347_vm0, %v978_v51  ;;  %v1986_v30 = vpop.eup %1985  ;;  %1995 = vrcp.f32 %v1353_v27  ;;  %v1021_v26 = vpop.permute.xlu1 %1020 }
 0x30c   : > { %1414 = vperm.xlu0 %1883, %v1986_v30   ;;  %v1094_v1 = vmul.f32 0.0, %v1021_v26 }
 0x30d   : > { %v1360_v16 = vld [vmem:[#allocation3 + $0x78] sm:$0xff] }
 0x30e   : > { %v1357_v56 = vld [vmem:[#allocation3 + $0x60] sm:$0xff] }
 0x30f   : > { %1997 = vrcp.f32 %v1357_v56  ;;  %v1988_v55 = vpop.eup %1987  ;;  %v1026_v11 = vpop.permute.xlu1 %1025 }
 0x310   : > { %1404 = vperm.xlu0 %1883, %v1988_v55   ;;  %v1016_v18 = vpop.permute.xlu0 %1015  ;;  %v1095_v38 = vmul.f32 0.0, %v1026_v11 }
 0x311   : > { %v1358_v31 = vld [vmem:[#allocation3 + $0x68] sm:$0xff]  ;;  %v1093_v45 = vmul.f32 0.0, %v1016_v18 }
 0x312   : > { %v1359_v52 = vld [vmem:[#allocation3 + $0x70] sm:$0xff]  ;;  %1999 = vrcp.f32 %v1358_v31 }
 0x313   : > { %v1990_v48 = vpop.eup %1989  ;;  %2001 = vrcp.f32 %v1359_v52  ;;  %v1036_v32 = vpop.permute.xlu1 %1035 }
 0x314   : > { %v1992_v23 = vpop.eup %1991  ;;  %1434 = vperm.xlu0 %1883, %v1990_v48   ;;  %2003 = vrcp.f32 %v1360_v16  ;;  %v1031_v34 = vpop.permute.xlu0 %1030  ;;  %v1097_v0 = vmul.f32 0.0, %v1036_v32 }
 0x315   : > { %1429 = vperm.xlu1 %1884, %v1992_v23   ;;  %v1096_v36 = vmul.f32 0.0, %v1031_v34 }
 0x317   : > { %v1994_v5 = vpop.eup %1993  ;;  %v1046_v40 = vpop.permute.xlu1 %1045 }
 0x318   : > { %v1996_v9 = vpop.eup %1995  ;;  %1424 = vperm.xlu0 %1883, %v1994_v5   ;;  %v1041_v44 = vpop.permute.xlu0 %1040  ;;  %v1099_v59 = vmul.f32 0.0, %v1046_v40 }
 0x319   : > { %1419 = vperm.xlu1 %1884, %v1996_v9   ;;  %v1098_v48 = vmul.f32 0.0, %v1041_v44 }
 0x31b   : > { %v2782_v47 = vpop.permute.xlu1 %1055  ;;  %v1790_v29 = vpop.f32.mrf.mxu1 }
 0x31c   : > { %v1998_v8 = vpop.eup %1997  ;;  %v1051_v50 = vpop.permute.xlu0 %1050  ;;  %v1280_v63 = vadd.f32 %v1790_v29, %v1095_v38  ;;  %v1101_v44 = vmul.f32 0.0, %v2782_v47 }
 0x31d   : > { %1439 = vperm.xlu1 %1884, %v1998_v8   ;;  %v1215_v60 = vpop.f32.mrf.mxu1  ;;  %v1100_v56 = vmul.f32 0.0, %v1051_v50 }
 0x31e   : > { %v1278_v53 = vadd.f32 %v1215_v60, %v1093_v45 }
 0x31f   : > { %v2000_v13 = vpop.eup %1999  ;;  %v1066_v37 = vpop.permute.xlu1 %1065 }
 0x320   : > { %v2002_v14 = vpop.eup %2001  ;;  %1444 = vperm.xlu0 %1883, %v2000_v13   ;;  %v2784_v57 = vpop.permute.xlu0 %1060 }
 0x321   : > { %1449 = vperm.xlu1 %1884, %v2002_v14   ;;  %v2004_v24 = vpop.eup %2003  ;;  %v1791_v4 = vpop.f32.mrf.mxu1  ;;  %v1103_v14 = vmul.f32 0.0, %v1066_v37  ;;  %v1102_v32 = vmul.f32 0.0, %v2784_v57 }
 0x322   : > { %v1281_v33 = vadd.f32 %v1791_v4, %v1096_v36 }
 0x323   : > { %v2786_v10 = vpop.permute.xlu1 %1075  ;;  %v1218_v20 = vpop.f32.mrf.mxu1 }
 0x324   : > { %1454 = vperm.xlu0 %1883, %v2004_v24   ;;  %v1071_v49 = vpop.permute.xlu0 %1070  ;;  %v1279_v62 = vadd.f32 %v1218_v20, %v1094_v1  ;;  %v1105_v38 = vmul.f32 0.0, %v2786_v10 }
 0x325   : > { %v1104_v8 = vmul.f32 0.0, %v1071_v49 }
 0x327   : > { %v2788_v21 = vpop.permute.xlu1 %1085 }
 0x328   : > { %v2790_v15 = vpop.permute.xlu0 %1080  ;;  %v1107_v45 = vmul.f32 0.0, %v2788_v21 }
 0x329   : > { %v1106_v47 = vmul.f32 0.0, %v2790_v15 }
 0x32c   : > { %v1794_v61 = vpop.f32.mrf.mxu1  ;;  %v2793_v35 = vpop.permute.xlu0 %1090 }
 0x32d   : > { %v1284_v2 = vadd.f32 %v1794_v61, %v1099_v59 }
 0x32e   : > { %v1231_v3 = vpop.f32.mrf.mxu1 }
 0x32f   : > { %v1282_v39 = vadd.f32 %v1231_v3, %v1097_v0 }
 0x330   : > { %v1795_v7 = vpop.f32.mrf.mxu1 }
 0x331   : > { %v1285_v55 = vadd.f32 %v1795_v7, %v1100_v56 }
 0x332   : > { %v1234_v46 = vpop.f32.mrf.mxu1 }
 0x333   : > { %v1283_v23 = vadd.f32 %v1234_v46, %v1098_v48 }
 0x334   : > { %v1798_v28 = vpop.f32.mrf.mxu1 }
 0x335   : > { %v1288_v26 = vadd.f32 %v1798_v28, %v1103_v14 }
 0x336   : > { %v1247_v51 = vpop.f32.mrf.mxu1 }
 0x337   : > { %v1286_v60 = vadd.f32 %v1247_v51, %v1101_v44 }
 0x338   : > { %v1799_v30 = vpop.f32.mrf.mxu1 }
 0x339   : > { %v1289_v24 = vadd.f32 %v1799_v30, %v1104_v8 }
 0x33a   : > { %v1250_v31 = vpop.f32.mrf.mxu1 }
 0x33b   : > { %v1287_v29 = vadd.f32 %v1250_v31, %v1102_v32 }
 0x33c   : > { %v1802_v5 = vpop.f32.mrf.mxu1 }
 0x33d   : > { %v1292_v36 = vadd.f32 %v1802_v5, %v1107_v45 }
 0x33e   : > { %v1263_v11 = vpop.f32.mrf.mxu1 }
 0x33f   : > { %v1290_v57 = vadd.f32 %v1263_v11, %v1105_v38 }
 0x340   : > { %v1803_v49 = vpop.f32.mrf.mxu1 }
 0x36d   : > { %v1390_v42 = vpop.permute.xlu1 %1389 }
 0x36e   : > { %v1459_v12 = vmul.f32 %v1390_v42, %v1280_v63  ;;  %v1266_v63 = vpop.f32.mrf.mxu1 }
 0x36f   : > { %v1291_v3 = vadd.f32 %v1266_v63, %v1106_v47 }
 0x370   : > { %1475 = vst [vmem:[%s2795_s24 + $0x10] sm:$0xff] %v1459_v12 }
 0x371   : > { %v1380_v17 = vpop.permute.xlu1 %1379 }
 0x372   : > { %v1457_v6 = vmul.f32 %v1380_v17, %v1278_v53  ;;  %v1108_v53 = vmul.f32 0.0, %v2793_v35 }
 0x373   : > { %v1395_v54 = vpop.permute.xlu0 %1394 }
 0x374   : > { %1473 = vst [vmem:[%s2795_s24] sm:$0xff] %v1457_v6  ;;  %v1460_v41 = vmul.f32 %v1395_v54, %v1281_v33  ;;  %v1293_v15 = vadd.f32 %v1803_v49, %v1108_v53 }
 0x376   : > { %1476 = vst [vmem:[%s2795_s24 + $0x18] sm:$0xff] %v1460_v41 }
 0x377   : > { %v1385_v22 = vpop.permute.xlu0 %1384 }
 0x378   : > { %v1458_v58 = vmul.f32 %v1385_v22, %v1279_v62 }
 0x37a   : > { %1474 = vst [vmem:[%s2795_s24 + $0x8] sm:$0xff] %v1458_v58 }
 0x37b   : > { %v1410_v19 = vpop.permute.xlu1 %1409 }
 0x37c   : > { %v1463_v25 = vmul.f32 %v1410_v19, %v1284_v2 }
 0x37e   : > { %1479 = vst [vmem:[%s2795_s24 + $0x30] sm:$0xff] %v1463_v25 }
 0x37f   : > { %v1400_v43 = vpop.permute.xlu1 %1399 }
 0x380   : > { %v1461_v27 = vmul.f32 %v1400_v43, %v1282_v39 }
 0x382   : > { %1477 = vst [vmem:[%s2795_s24 + $0x20] sm:$0xff] %v1461_v27 }
 0x387   : > { %v1415_v52 = vpop.permute.xlu0 %1414 }
 0x388   : > { %v1464_v16 = vmul.f32 %v1415_v52, %v1285_v55 }
 0x38a   : > { %1480 = vst [vmem:[%s2795_s24 + $0x38] sm:$0xff] %v1464_v16 }
 0x38b   : > { %v1405_v9 = vpop.permute.xlu0 %1404 }
 0x38c   : > { %v1462_v13 = vmul.f32 %v1405_v9, %v1283_v23 }
 0x38e   : > { %1478 = vst [vmem:[%s2795_s24 + $0x28] sm:$0xff] %v1462_v13 }
 0x38f   : > { %v1435_v18 = vpop.permute.xlu0 %1434 }
 0x390   : > { %v1468_v34 = vmul.f32 %v1435_v18, %v1289_v24  ;;  %v1430_v40 = vpop.permute.xlu1 %1429 }
 0x391   : > { %v1467_v50 = vmul.f32 %v1430_v40, %v1288_v26 }
 0x392   : > { %1484 = vst [vmem:[%s2795_s24 + $0x58] sm:$0xff] %v1468_v34 }
 0x393   : > { %1483 = vst [vmem:[%s2795_s24 + $0x50] sm:$0xff] %v1467_v50  ;;  %v1425_v37 = vpop.permute.xlu0 %1424 }
 0x394   : > { %v1466_v4 = vmul.f32 %v1425_v37, %v1287_v29  ;;  %v1420_v20 = vpop.permute.xlu1 %1419 }
 0x395   : > { %v1465_v61 = vmul.f32 %v1420_v20, %v1286_v60 }
 0x396   : > { %1482 = vst [vmem:[%s2795_s24 + $0x48] sm:$0xff] %v1466_v4 }
 0x397   : > { %1481 = vst [vmem:[%s2795_s24 + $0x40] sm:$0xff] %v1465_v61 }
 0x398   : > { %v1440_v42 = vpop.permute.xlu1 %1439 }
 0x399   : > { %v1469_v12 = vmul.f32 %v1440_v42, %v1290_v57 }
 0x39b   : > { %1485 = vst [vmem:[%s2795_s24 + $0x60] sm:$0xff] %v1469_v12  ;;  %v1445_v10 = vpop.permute.xlu0 %1444 }
 0x39c   : > { %v1470_v17 = vmul.f32 %v1445_v10, %v1291_v3  ;;  %v1450_v33 = vpop.permute.xlu1 %1449 }
 0x39d   : > { %v1471_v6 = vmul.f32 %v1450_v33, %v1292_v36 }
 0x39e   : > { %1486 = vst [vmem:[%s2795_s24 + $0x68] sm:$0xff] %v1470_v17 }
 0x39f   : > { %1487 = vst [vmem:[%s2795_s24 + $0x70] sm:$0xff] %v1471_v6  ;;  %v1455_v7 = vpop.permute.xlu0 %1454 }
 0x3a0   : > { %v1472_v21 = vmul.f32 %v1455_v7, %v1293_v15 }
 0x3a2   : > { %1488 = vst [vmem:[%s2795_s24 + $0x78] sm:$0xff] %v1472_v21 }
 0x3a3   : > { %2102 = shalt.err (!%p2099_p12)
}
 0x3a4   : > { %s2103_s8 = scalar_lea.hbm %s2823_s11, 2048  ;;  %s2107_s19 = scalar_lea.hbm %s2878_s4, 4096 }
 0x3a5   : > { %p2104_p1 = scmp.ne.s32.totalorder %s2823_s11, %s2103_s8  ;;  %p2108_p6 = scmp.lt.s32.totalorder %s2823_s11, %s2878_s4 }
 0x3a6   : > { %p2109_p7 = scmp.lt.s32.totalorder %s2107_s19, %s2103_s8 }
 0x3a7   : > { %p2105_p2 = pnand %p2104_p1, %p2266_p9 }
 0x3a8   : > { %p2110_p8 = por %p2109_p7, %p2108_p6 }
 0x3a9   : > { %p2106_p5 = pneg %p2105_p2 }
 0x3ab   : > { %p2111_p0 = pnand %p2110_p8, %p2106_p5 }
 0x3ad   : > { %2114 = shalt.err (!%p2111_p0)
}
 0x3ae   : > { %s2184_s21 = smov 128   ;;  %s2185_s27 = smov 8  }
 0x3af   : > { %1810 = dma.vmem_to_hbm [thread:$0]  (%p2266_p9), %s2825_s23, 2048, %s2823_s11, %s1490_s10, %s2184_s21, %s2184_s21, %s2185_s27  }
 0x3b0 PF: > { %s1520_s13 = sand.u32 1, %s2153_s15   ;;  %p2914_p3 = scmp.ge.s32.totalorder %s2173_s20, 2 }
 0x3b1   : > { %s1521_s24 = scalar_lea.sflag [#allocation7], %s1520_s13 }
 0x3b2   : > { %p1823_p4 = pnand %p2914_p3, %p2273_p11 }
 0x3b4   : > { %p1824_p10 = pneg %p1823_p4 }
 0x3b6   : > { %2148 = dma.done.wait (%p1824_p10), %s1521_s24, 2048  }
 0x3b7   : > { %2150 = vsyncadd (%p1824_p10), %s1521_s24, 4294965248  ;;  %s23_s20 = sadd.s32 1, %s2173_s20   ;;  %s2915_s28 = sld [smem:[#allocation17_spill]] }
 0x3b8   : > { %p20_p13 = scmp.ge.s32.totalorder %s23_s20, 4   ;;  %s2916_s18 = sld [smem:[#allocation15_spill]] }
 0x3b9   : > { %s2917_s19 = sld [smem:[#allocation16_spill]]  ;;  %s2918_s15 = smov %s2157_s16 }
 0x3ba   : > { %s2919_s16 = smov %s2161_s17  ;;  %22 = sbr.rel (!%p20_p13) target bundleno = 10 (0xa), region = 116 }
 0x3bd   : > { %s2920_s17 = smov %s2915_s28 }
 0x3bf   :  { %1526 = vsyncpa [#allocation6], 1 }
 0x3c0   :  { %1528 = vsyncpa [#allocation6 + $0x1], 1 }
 0x3c1   :  { %1529 = vsyncpa [#allocation9], 1 }
 0x3c2   :  { %1531 = vsyncpa [#allocation9 + $0x1], 1 }
 0x3c3   :  { %1532 = vsyncpa [#allocation7], 1 }
 0x3c4   :  { %1534 = vsyncpa [#allocation7 + $0x1], 1 }

</bundles_post_ra>
